<compile_context>
chip_gen: v7x
topology: tpu7x:2x2x1
jax: 0.10.0
libtpu: 0.0.40
codegen_flags: <defaults>
</compile_context>

<pallas_src>
import functools
import math

import jax
import jax.numpy as jnp
from jax.experimental import pallas as pl
from jax.experimental.pallas import tpu as pltpu


# ------------------------------ fused kernel ------------------------------- #

def _qnet_kernel(x_ref, sel_score_ref, sel_agg_ref, avg_ref,
                 tok_w_ref, time_w_ref,
                 wqkv_ref, bqkv_ref, wo_ref, bo_ref, w1_ref, w2_ref,
                 ln_g_ref, ln_b_ref, w_out_ref, b_out_ref,
                 o_ref, *,
                 seq_len, enc_in, d_model, e_layers, top_k, eps):
    L = seq_len
    f32 = jnp.float32
    cdt = wqkv_ref.dtype                      # matmul operand dtype (bf16 or f32)

    xb = x_ref[...].astype(f32)               # (Bt, L, C) batch tile
    Bt = xb.shape[0]
    BtL = Bt * L
    x_enc = xb[:, :, :enc_in]
    x_mark = xb[:, :, enc_in:]

    def roll_time(a, shift):
        # out[:, t, :] = a[:, (t - shift) % L, :]  (jnp.roll semantics along time, per batch)
        s = shift % L
        if s == 0:
            return a
        return jnp.concatenate([a[:, L - s:, :], a[:, :L - s, :]], axis=1)

    def tokmm(a, w):
        # flatten tokens -> one tall (Bt*L, .) MXU matmul, f32 accumulation
        return jnp.dot(a.reshape(BtL, a.shape[-1]).astype(cdt), w,
                       preferred_element_type=f32)

    # ---- DataEmbedding_wo_pos ----
    # TokenEmbedding: circular Conv1d(enc_in -> d_model, k=3, no bias):
    #   out[t] = sum_k x_enc[(t + k - 1) % L] @ tok_w[k]
    h2 = tokmm(roll_time(x_enc, 1), tok_w_ref[0])
    h2 = h2 + tokmm(x_enc, tok_w_ref[1])
    h2 = h2 + tokmm(roll_time(x_enc, -1), tok_w_ref[2])
    # TimeFeatureEmbedding: Linear(n_marks -> d_model, no bias); dropout = identity (eval)
    if x_mark.shape[-1] > 0:
        h2 = h2 + tokmm(x_mark, time_w_ref[...])
    h3 = h2.reshape(Bt, L, d_model)                              # (Bt, L, D) f32

    # ---- constants hoisted out of the layer loop ----
    sel_score = sel_score_ref[...]                               # (L*L, L)
    sel_agg = sel_agg_ref[...]                                   # (L, L*L)
    avg_b = jnp.broadcast_to(avg_ref[...], (Bt, L, L))           # (Bt, L, L) moving-avg matrix
    inv_d = 1.0 / d_model

    def decomp_res(a):
        # series_decomp(a)[0] = a - moving_average(a); replicate padding baked into avg matrix
        return a - jnp.einsum('bts,bsd->btd', avg_b, a, preferred_element_type=f32)

    # e_layers is small & static; switch to lax.fori_loop for deep encoders.
    for li in range(e_layers):
        # -- AutoCorrelationLayer: fused Q/K/V projection over flattened tokens --
        h2 = h3.reshape(BtL, d_model)
        qkv = jnp.dot(h2.astype(cdt), wqkv_ref[li],
                      preferred_element_type=f32) + bqkv_ref[li]           # (Bt*L, 3D)
        q = qkv[:, 0:d_model].reshape(Bt, L, d_model)
        k = qkv[:, d_model:2 * d_model].reshape(Bt, L, d_model)
        v = qkv[:, 2 * d_model:3 * d_model].reshape(Bt, L, d_model)

        # -- AutoCorrelation scores (eval / time_delay_agg_inference) --
        # score[b, tau] = (1/D) sum_{t,d} q[b,(t+tau)%L,d] * k[b,t,d]
        #              = (1/D) * wrapped-diagonal sums of G = q @ k^T  (MXU + selection matmul)
        G = jnp.einsum('bld,bmd->blm', q, k, preferred_element_type=f32)   # (Bt, L, L)
        score = jnp.dot(G.reshape(Bt, L * L), sel_score,
                        preferred_element_type=f32) * inv_d                # (Bt, L)

        # top-k lags via iterative-max threshold (== torch.topk for distinct scores)
        rem = score
        thr = score
        for _ in range(top_k):
            thr = jnp.max(rem, axis=1, keepdims=True)
            rem = jnp.where(rem >= thr, -jnp.inf, rem)
        selm = score >= thr                                                # (Bt, L)
        mx = jnp.max(score, axis=1, keepdims=True)
        ew = jnp.where(selm, jnp.exp(score - mx), 0.0)
        p = ew / jnp.sum(ew, axis=1, keepdims=True)        # softmax over the selected lags

        # -- delay aggregation as circulant matmul: C[b,t,s] = p[b,(s-t)%L]; attn = C @ v --
        C = jnp.dot(p, sel_agg, preferred_element_type=f32).reshape(Bt, L, L)
        attn = jnp.einsum('bts,bsd->btd', C, v, preferred_element_type=f32)  # (Bt, L, D)

        new_x = jnp.dot(attn.reshape(BtL, d_model).astype(cdt), wo_ref[li],
                        preferred_element_type=f32) + bo_ref[li]             # (Bt*L, D)

        # -- EncoderLayer: decomp1 -> 1x1-conv FFN (ReLU) -> decomp2 --
        x1 = decomp_res(h3 + new_x.reshape(Bt, L, d_model))
        y = jnp.maximum(jnp.dot(x1.reshape(BtL, d_model).astype(cdt), w1_ref[li],
                                preferred_element_type=f32), 0.0)
        y = jnp.dot(y.astype(cdt), w2_ref[li], preferred_element_type=f32)
        h3 = decomp_res(x1 + y.reshape(Bt, L, d_model))

    # ---- my_Layernorm: LayerNorm over d_model, then subtract the time-mean ----
    mu = jnp.mean(h3, axis=2, keepdims=True)
    var = jnp.mean((h3 - mu) * (h3 - mu), axis=2, keepdims=True)
    xh = (h3 - mu) * jax.lax.rsqrt(var + eps) * ln_g_ref[...] + ln_b_ref[...]
    xh = xh - jnp.mean(xh, axis=1, keepdims=True)

    # ---- QNetwork head: last time step -> ReLU -> Linear (one write per batch tile) ----
    last = jnp.maximum(xh[:, L - 1, :], 0.0)                                 # (Bt, D)
    o_ref[...] = (jnp.dot(last.astype(cdt), w_out_ref[...],
                          preferred_element_type=f32) + b_out_ref[...]).astype(o_ref.dtype)


# ------------------------------ Python wrapper ------------------------------ #

def qnetwork_forward(params, x, cfg, *, b_tile=64, matmul_dtype=jnp.bfloat16):
    if x.dtype != jnp.float32:
        x = x.astype(jnp.float32)
    bsz, seq_len, c_total = x.shape
    enc_in = cfg["enc_in"]
    d_model = cfg["d_model"]
    d_ff = cfg["d_ff"]
    act_dim = params["b_out"].shape[-1]
    moving_avg = cfg["moving_avg"]
    assert moving_avg % 2 == 1, "series_decomp assumes an odd moving_avg kernel"
    top_k = min(int(cfg["factor"] * math.log(seq_len)), seq_len)
    assert top_k >= 1, "factor * log(seq_len) must yield top_k >= 1"

    # ---- batch tile: fill sublanes / MXU M-dim, amortise per-step overhead ----
    b_tile = int(min(b_tile, bsz))
    if b_tile < bsz:
        b_tile = max(8, (b_tile // 8) * 8)        # partial tiles need 8-aligned 2nd-to-last dim
    grid_b = pl.cdiv(bsz, b_tile)
    if grid_b == 1 and bsz >= 16:
        # keep >= 2 batch tiles so ("parallel",) can shard across v7x's two TensorCores
        b_tile = max(8, -(-((bsz + 1) // 2) // 8) * 8)
        grid_b = pl.cdiv(bsz, b_tile)

    # ---- constant selection / averaging matrices (static shapes; constant-folded by XLA) ----
    ar = jnp.arange(seq_len, dtype=jnp.int32)
    i_ = ar[:, None, None]
    j_ = ar[None, :, None]
    t_ = ar[None, None, :]
    # sel_score[i*L+j, tau] = [(i - j) % L == tau]  -> wrapped-diagonal sums of G = q @ k^T
    sel_score = ((i_ - j_) % seq_len == t_).astype(jnp.float32).reshape(
        seq_len * seq_len, seq_len)
    # sel_agg[tau, t*L+s] = [(s - t) % L == tau]    -> circulant C[t,s] = p[(s-t)%L]
    sel_agg = ((t_ - j_) % seq_len == i_).astype(jnp.float32).reshape(
        seq_len, seq_len * seq_len)
    # replicate-padded moving-average matrix A: moving_avg(a) = A @ a  (per batch element)
    pad = (moving_avg - 1) // 2
    win = jnp.clip(ar[:, None] + jnp.arange(-pad, pad + 1, dtype=jnp.int32)[None, :],
                   0, seq_len - 1)                                   # (L, k)
    avg_mat = jax.nn.one_hot(win, seq_len, dtype=jnp.float32).sum(axis=1) / float(moving_avg)

    consts = [sel_score, sel_agg, avg_mat]

    # ---- weight stacks: matmul operands in bf16 (f32 accumulate); biases/LN stay f32 ----
    md = jnp.dtype(matmul_dtype)
    f32 = jnp.float32
    weights = [
        params["tok_w"].astype(md), params["time_w"].astype(md),
        params["wqkv"].astype(md), params["bqkv"].astype(f32),
        params["wo"].astype(md), params["bo"].astype(f32),
        params["w1"].astype(md), params["w2"].astype(md),
        params["ln_g"].astype(f32), params["ln_b"].astype(f32),
        params["w_out"].astype(md), params["b_out"].astype(f32),
    ]

    kern = functools.partial(
        _qnet_kernel,
        seq_len=seq_len, enc_in=enc_in, d_model=d_model,
        e_layers=cfg["e_layers"], top_k=top_k, eps=1e-5)

    def full_spec(arr):
        nd = arr.ndim
        return pl.BlockSpec(arr.shape, lambda b, _nd=nd: (0,) * _nd)

    in_specs = ([pl.BlockSpec((b_tile, seq_len, c_total), lambda b: (b, 0, 0))]
                + [full_spec(a) for a in consts + weights])
    out_specs = pl.BlockSpec((b_tile, act_dim), lambda b: (b, 0))

    # ---- explicit VMEM budget (all weights resident + double-buffered; v7x has 64 MiB,
    #      v5e's default scoped limit is only 16 MiB) ----
    def _nbytes(shape, dtype):
        n = 1
        for s in shape:
            n *= int(s)
        return n * jnp.dtype(dtype).itemsize

    resident = 2 * sum(_nbytes(a.shape, a.dtype) for a in consts + weights)
    resident += 2 * (_nbytes((b_tile, seq_len, c_total), jnp.float32)
                     + _nbytes((b_tile, act_dim), jnp.float32))
    work = 4 * b_tile * seq_len * (10 * d_model + d_ff + 3 * seq_len)   # rough activation set
    vmem_limit = int(min(64 << 20, max(32 << 20, 2 * (resident + work))))
    # TODO(synk): for non-toy configs (large d_model/e_layers) index per-layer weight blocks
    # with a layer grid axis instead of keeping every layer's weights VMEM-resident.

    out = pl.pallas_call(
        kern,
        out_shape=jax.ShapeDtypeStruct((bsz, act_dim), jnp.float32),
        grid_spec=pltpu.PrefetchScalarGridSpec(
            num_scalar_prefetch=0,
            grid=(grid_b,),
            in_specs=in_specs,
            out_specs=out_specs,
        ),
        compiler_params=pltpu.CompilerParams(
            dimension_semantics=("parallel",),
            vmem_limit_bytes=vmem_limit),
    )(x, *consts, *weights)
    return out


# ------------------------------ Parameter init ------------------------------ #

def init_params(key, cfg, act_dim):
    d_model, d_ff = cfg["d_model"], cfg["d_ff"]
    enc_in, e_layers = cfg["enc_in"], cfg["e_layers"]
    mark_dim = 4  # freq='h' -> 4 time features

    def rnd(k, shape, scale=0.1):
        return (scale * jax.random.normal(k, shape)).astype(jnp.float32)

    keys = jax.random.split(key, 12)
    return {
        # circular-conv token embedding; tok_w[k] == torch Conv1d weight[:, :, k].T
        "tok_w": rnd(keys[0], (3, enc_in, d_model)),
        "time_w": rnd(keys[1], (mark_dim, d_model)),          # TimeFeatureEmbedding (no bias)
        "ln_g": jnp.ones((1, d_model), jnp.float32),
        "ln_b": jnp.zeros((1, d_model), jnp.float32),
        "w_out": rnd(keys[2], (d_model, act_dim)),
        "b_out": rnd(keys[3], (1, act_dim)),
        # per-layer weights stacked on a leading e_layers axis; Q/K/V fused along N
        "wqkv": rnd(keys[4], (e_layers, d_model, 3 * d_model)),
        "bqkv": rnd(keys[5], (e_layers, 1, 3 * d_model)),
        "wo": rnd(keys[6], (e_layers, d_model, d_model)),
        "bo": rnd(keys[7], (e_layers, 1, d_model)),
        "w1": rnd(keys[8], (e_layers, d_model, d_ff)),        # conv1 (k=1, no bias)
        "w2": rnd(keys[9], (e_layers, d_ff, d_model)),        # conv2 (k=1, no bias)
    }


# ---------------------------------- Main ------------------------------------ #

if __name__ == "__main__":
    cfg = dict(seq_len=8, label_len=4, pred_len=4, enc_in=4, d_model=32, n_heads=4,
               e_layers=2, d_ff=32, moving_avg=5, factor=1, dropout=0.0,
               embed="timeF", freq="h", activation="relu", output_attention=False)
    act_dim = 3

    key = jax.random.PRNGKey(0)
    pkey, xkey = jax.random.split(key)
    params = init_params(pkey, cfg, act_dim)

    # Input mirrors the torch module: (B, seq_len, enc_in + 4 time-feature marks)
    x = jax.random.normal(xkey, (2, cfg["seq_len"], cfg["enc_in"] + 4), jnp.float32)

    fwd = jax.jit(functools.partial(qnetwork_forward, cfg=cfg))
    out = jax.block_until_ready(fwd(params, x))
    assert out.shape == (2, act_dim) and out.dtype == jnp.float32
    print("KERNEL_OK")
</pallas_src>

<mosaic_0001>
module attributes {stable_mosaic.version = 11 : i64} {
  func.func @_qnet_kernel(%arg0: i32, %arg1: memref<2x8x8xf32, #tpu.memory_space<vmem>>, %arg2: memref<64x8xf32, #tpu.memory_space<vmem>>, %arg3: memref<8x64xf32, #tpu.memory_space<vmem>>, %arg4: memref<8x8xf32, #tpu.memory_space<vmem>>, %arg5: memref<3x4x32xbf16, #tpu.memory_space<vmem>>, %arg6: memref<4x32xbf16, #tpu.memory_space<vmem>>, %arg7: memref<2x32x96xbf16, #tpu.memory_space<vmem>>, %arg8: memref<2x1x96xf32, #tpu.memory_space<vmem>>, %arg9: memref<2x32x32xbf16, #tpu.memory_space<vmem>>, %arg10: memref<2x1x32xf32, #tpu.memory_space<vmem>>, %arg11: memref<2x32x32xbf16, #tpu.memory_space<vmem>>, %arg12: memref<2x32x32xbf16, #tpu.memory_space<vmem>>, %arg13: memref<1x32xf32, #tpu.memory_space<vmem>>, %arg14: memref<1x32xf32, #tpu.memory_space<vmem>>, %arg15: memref<32x3xbf16, #tpu.memory_space<vmem>>, %arg16: memref<1x3xf32, #tpu.memory_space<vmem>>, %arg17: memref<2x3xf32, #tpu.memory_space<vmem>>) attributes {dimension_semantics = [#tpu.dimension_semantics<parallel>], iteration_bounds = array<i64: 1>, scalar_prefetch = 0 : i64, scratch_operands = 0 : i64, tpu.core_type = #tpu.core_type<tc>, window_params = [{transform_indices = @transform_0, window_bounds = array<i64: 2, 8, 8>}, {pipeline_mode = #tpu.pipeline_mode<synchronous>, transform_indices = @transform_1, window_bounds = array<i64: 64, 8>}, {pipeline_mode = #tpu.pipeline_mode<synchronous>, transform_indices = @transform_2, window_bounds = array<i64: 8, 64>}, {pipeline_mode = #tpu.pipeline_mode<synchronous>, transform_indices = @transform_3, window_bounds = array<i64: 8, 8>}, {pipeline_mode = #tpu.pipeline_mode<synchronous>, transform_indices = @transform_4, window_bounds = array<i64: 3, 4, 32>}, {pipeline_mode = #tpu.pipeline_mode<synchronous>, transform_indices = @transform_5, window_bounds = array<i64: 4, 32>}, {pipeline_mode = #tpu.pipeline_mode<synchronous>, transform_indices = @transform_6, window_bounds = array<i64: 2, 32, 96>}, {pipeline_mode = #tpu.pipeline_mode<synchronous>, transform_indices = @transform_7, window_bounds = array<i64: 2, 1, 96>}, {pipeline_mode = #tpu.pipeline_mode<synchronous>, transform_indices = @transform_8, window_bounds = array<i64: 2, 32, 32>}, {pipeline_mode = #tpu.pipeline_mode<synchronous>, transform_indices = @transform_9, window_bounds = array<i64: 2, 1, 32>}, {pipeline_mode = #tpu.pipeline_mode<synchronous>, transform_indices = @transform_10, window_bounds = array<i64: 2, 32, 32>}, {pipeline_mode = #tpu.pipeline_mode<synchronous>, transform_indices = @transform_11, window_bounds = array<i64: 2, 32, 32>}, {pipeline_mode = #tpu.pipeline_mode<synchronous>, transform_indices = @transform_12, window_bounds = array<i64: 1, 32>}, {pipeline_mode = #tpu.pipeline_mode<synchronous>, transform_indices = @transform_13, window_bounds = array<i64: 1, 32>}, {pipeline_mode = #tpu.pipeline_mode<synchronous>, transform_indices = @transform_14, window_bounds = array<i64: 32, 3>}, {pipeline_mode = #tpu.pipeline_mode<synchronous>, transform_indices = @transform_15, window_bounds = array<i64: 1, 3>}, {transform_indices = @transform_16, window_bounds = array<i64: 2, 3>}]} {
    %c0 = arith.constant 0 : index
    %c0_0 = arith.constant 0 : index
    %c0_1 = arith.constant 0 : index
    %0 = vector.load %arg1[%c0, %c0_0, %c0_1] : memref<2x8x8xf32, #tpu.memory_space<vmem>>, vector<2x8x8xf32>
    %1 = vector.extract_strided_slice %0 {offsets = [0, 0, 0], sizes = [2, 8, 4], strides = [1, 1, 1]} : vector<2x8x8xf32> to vector<2x8x4xf32>
    %2 = vector.extract_strided_slice %0 {offsets = [0, 0, 4], sizes = [2, 8, 4], strides = [1, 1, 1]} : vector<2x8x8xf32> to vector<2x8x4xf32>
    %3 = vector.extract_strided_slice %1 {offsets = [0, 7, 0], sizes = [2, 1, 4], strides = [1, 1, 1]} : vector<2x8x4xf32> to vector<2x1x4xf32>
    %4 = vector.extract_strided_slice %1 {offsets = [0, 0, 0], sizes = [2, 7, 4], strides = [1, 1, 1]} : vector<2x8x4xf32> to vector<2x7x4xf32>
    %5 = tpu.concatenate %3, %4 in 1 : vector<2x1x4xf32>, vector<2x7x4xf32> -> vector<2x8x4xf32>
    %c0_2 = arith.constant 0 : index
    %c0_3 = arith.constant 0 : index
    %c0_4 = arith.constant 0 : index
    %6 = vector.load %arg5[%c0_2, %c0_3, %c0_4] : memref<3x4x32xbf16, #tpu.memory_space<vmem>>, vector<1x4x32xbf16>
    %7 = vector.shape_cast %6 : vector<1x4x32xbf16> to vector<4x32xbf16>
    %8 = vector.shape_cast %5 : vector<2x8x4xf32> to vector<16x4xf32>
    %9 = arith.truncf %8 : vector<16x4xf32> to vector<16x4xbf16>
    %cst = arith.constant dense<0.000000e+00> : vector<16x32xf32>
    %10 = tpu.matmul %9, %7, %cst {dimension_numbers = #tpu.dot_dimension_numbers<[1], [0], [0], [1], [0, 0, 1, 1], [], []>} : vector<16x4xbf16>, vector<4x32xbf16>, vector<16x32xf32> -> vector<16x32xf32>
    %c1 = arith.constant 1 : index
    %c0_5 = arith.constant 0 : index
    %c0_6 = arith.constant 0 : index
    %11 = vector.load %arg5[%c1, %c0_5, %c0_6] : memref<3x4x32xbf16, #tpu.memory_space<vmem>>, vector<1x4x32xbf16>
    %12 = vector.shape_cast %11 : vector<1x4x32xbf16> to vector<4x32xbf16>
    %13 = vector.shape_cast %1 : vector<2x8x4xf32> to vector<16x4xf32>
    %14 = arith.truncf %13 : vector<16x4xf32> to vector<16x4xbf16>
    %cst_7 = arith.constant dense<0.000000e+00> : vector<16x32xf32>
    %15 = tpu.matmul %14, %12, %cst_7 {dimension_numbers = #tpu.dot_dimension_numbers<[1], [0], [0], [1], [0, 0, 1, 1], [], []>} : vector<16x4xbf16>, vector<4x32xbf16>, vector<16x32xf32> -> vector<16x32xf32>
    %16 = arith.addf %10, %15 : vector<16x32xf32>
    %17 = vector.extract_strided_slice %1 {offsets = [0, 1, 0], sizes = [2, 7, 4], strides = [1, 1, 1]} : vector<2x8x4xf32> to vector<2x7x4xf32>
    %18 = vector.extract_strided_slice %1 {offsets = [0, 0, 0], sizes = [2, 1, 4], strides = [1, 1, 1]} : vector<2x8x4xf32> to vector<2x1x4xf32>
    %19 = tpu.concatenate %17, %18 in 1 : vector<2x7x4xf32>, vector<2x1x4xf32> -> vector<2x8x4xf32>
    %c2 = arith.constant 2 : index
    %c0_8 = arith.constant 0 : index
    %c0_9 = arith.constant 0 : index
    %20 = vector.load %arg5[%c2, %c0_8, %c0_9] : memref<3x4x32xbf16, #tpu.memory_space<vmem>>, vector<1x4x32xbf16>
    %21 = vector.shape_cast %20 : vector<1x4x32xbf16> to vector<4x32xbf16>
    %22 = vector.shape_cast %19 : vector<2x8x4xf32> to vector<16x4xf32>
    %23 = arith.truncf %22 : vector<16x4xf32> to vector<16x4xbf16>
    %cst_10 = arith.constant dense<0.000000e+00> : vector<16x32xf32>
    %24 = tpu.matmul %23, %21, %cst_10 {dimension_numbers = #tpu.dot_dimension_numbers<[1], [0], [0], [1], [0, 0, 1, 1], [], []>} : vector<16x4xbf16>, vector<4x32xbf16>, vector<16x32xf32> -> vector<16x32xf32>
    %25 = arith.addf %16, %24 : vector<16x32xf32>
    %c0_11 = arith.constant 0 : index
    %c0_12 = arith.constant 0 : index
    %26 = vector.load %arg6[%c0_11, %c0_12] : memref<4x32xbf16, #tpu.memory_space<vmem>>, vector<4x32xbf16>
    %27 = vector.shape_cast %2 : vector<2x8x4xf32> to vector<16x4xf32>
    %28 = arith.truncf %27 : vector<16x4xf32> to vector<16x4xbf16>
    %cst_13 = arith.constant dense<0.000000e+00> : vector<16x32xf32>
    %29 = tpu.matmul %28, %26, %cst_13 {dimension_numbers = #tpu.dot_dimension_numbers<[1], [0], [0], [1], [0, 0, 1, 1], [], []>} : vector<16x4xbf16>, vector<4x32xbf16>, vector<16x32xf32> -> vector<16x32xf32>
    %30 = arith.addf %25, %29 : vector<16x32xf32>
    %31 = vector.shape_cast %30 : vector<16x32xf32> to vector<2x8x32xf32>
    %c0_14 = arith.constant 0 : index
    %c0_15 = arith.constant 0 : index
    %32 = vector.load %arg2[%c0_14, %c0_15] : memref<64x8xf32, #tpu.memory_space<vmem>>, vector<64x8xf32>
    %c0_16 = arith.constant 0 : index
    %c0_17 = arith.constant 0 : index
    %33 = vector.load %arg3[%c0_16, %c0_17] : memref<8x64xf32, #tpu.memory_space<vmem>>, vector<8x64xf32>
    %c0_18 = arith.constant 0 : index
    %c0_19 = arith.constant 0 : index
    %34 = vector.load %arg4[%c0_18, %c0_19] : memref<8x8xf32, #tpu.memory_space<vmem>>, vector<8x8xf32>
    %35 = vector.shape_cast %34 : vector<8x8xf32> to vector<1x8x8xf32>
    %36 = vector.broadcast %35 : vector<1x8x8xf32> to vector<2x8x8xf32>
    %37 = vector.shape_cast %31 : vector<2x8x32xf32> to vector<16x32xf32>
    %38 = arith.truncf %37 : vector<16x32xf32> to vector<16x32xbf16>
    %c0_20 = arith.constant 0 : index
    %c0_21 = arith.constant 0 : index
    %c0_22 = arith.constant 0 : index
    %39 = vector.load %arg7[%c0_20, %c0_21, %c0_22] : memref<2x32x96xbf16, #tpu.memory_space<vmem>>, vector<1x32x96xbf16>
    %40 = vector.shape_cast %39 : vector<1x32x96xbf16> to vector<32x96xbf16>
    %cst_23 = arith.constant dense<0.000000e+00> : vector<16x96xf32>
    %41 = tpu.matmul %38, %40, %cst_23 {dimension_numbers = #tpu.dot_dimension_numbers<[1], [0], [0], [1], [0, 0, 1, 1], [], []>} : vector<16x32xbf16>, vector<32x96xbf16>, vector<16x96xf32> -> vector<16x96xf32>
    %c0_24 = arith.constant 0 : index
    %c0_25 = arith.constant 0 : index
    %c0_26 = arith.constant 0 : index
    %42 = vector.load %arg8[%c0_24, %c0_25, %c0_26] : memref<2x1x96xf32, #tpu.memory_space<vmem>>, vector<1x1x96xf32>
    %43 = vector.shape_cast %42 : vector<1x1x96xf32> to vector<1x96xf32>
    %44 = vector.broadcast %43 : vector<1x96xf32> to vector<16x96xf32>
    %45 = arith.addf %41, %44 : vector<16x96xf32>
    %46 = vector.extract_strided_slice %45 {offsets = [0, 0], sizes = [16, 32], strides = [1, 1]} : vector<16x96xf32> to vector<16x32xf32>
    %47 = vector.shape_cast %46 : vector<16x32xf32> to vector<2x8x32xf32>
    %48 = vector.extract_strided_slice %45 {offsets = [0, 32], sizes = [16, 32], strides = [1, 1]} : vector<16x96xf32> to vector<16x32xf32>
    %49 = vector.shape_cast %48 : vector<16x32xf32> to vector<2x8x32xf32>
    %50 = vector.extract_strided_slice %45 {offsets = [0, 64], sizes = [16, 32], strides = [1, 1]} : vector<16x96xf32> to vector<16x32xf32>
    %51 = vector.shape_cast %50 : vector<16x32xf32> to vector<2x8x32xf32>
    "tpu.trace_start"() <{level = 10 : i32, message = "bld,bmd->blm"}> : () -> ()
    %cst_27 = arith.constant dense<0.000000e+00> : vector<2x8x8xf32>
    %52 = tpu.matmul %47, %49, %cst_27 {dimension_numbers = #tpu.dot_dimension_numbers<[2], [2], [1], [1], [0, 0, 0, 1, 1, 1], [0], [0]>} : vector<2x8x32xf32>, vector<2x8x32xf32>, vector<2x8x8xf32> -> vector<2x8x8xf32>
    "tpu.trace_stop"() : () -> ()
    %53 = vector.shape_cast %52 : vector<2x8x8xf32> to vector<2x64xf32>
    %cst_28 = arith.constant dense<0.000000e+00> : vector<2x8xf32>
    %54 = tpu.matmul %53, %32, %cst_28 {dimension_numbers = #tpu.dot_dimension_numbers<[1], [0], [0], [1], [0, 0, 1, 1], [], []>} : vector<2x64xf32>, vector<64x8xf32>, vector<2x8xf32> -> vector<2x8xf32>
    %cst_29 = arith.constant 3.125000e-02 : f32
    %55 = vector.broadcast %cst_29 : f32 to vector<2x8xf32>
    %56 = arith.mulf %54, %55 : vector<2x8xf32>
    %cst_30 = arith.constant dense<0xFF800000> : vector<2xf32>
    %57 = vector.multi_reduction <maximumf>, %56, %cst_30 [1] : vector<2x8xf32> to vector<2xf32>
    %58 = vector.shape_cast %57 : vector<2xf32> to vector<2x1xf32>
    %59 = vector.broadcast %58 : vector<2x1xf32> to vector<2x8xf32>
    %60 = arith.cmpf oge, %56, %59 : vector<2x8xf32>
    %cst_31 = arith.constant 0xFF800000 : f32
    %61 = vector.broadcast %cst_31 : f32 to vector<2x8xf32>
    %62 = arith.select %60, %61, %56 : vector<2x8xi1>, vector<2x8xf32>
    %cst_32 = arith.constant dense<0xFF800000> : vector<2xf32>
    %63 = vector.multi_reduction <maximumf>, %62, %cst_32 [1] : vector<2x8xf32> to vector<2xf32>
    %64 = vector.shape_cast %63 : vector<2xf32> to vector<2x1xf32>
    %65 = vector.broadcast %64 : vector<2x1xf32> to vector<2x8xf32>
    %66 = arith.cmpf oge, %56, %65 : vector<2x8xf32>
    %cst_33 = arith.constant dense<0xFF800000> : vector<2xf32>
    %67 = vector.multi_reduction <maximumf>, %56, %cst_33 [1] : vector<2x8xf32> to vector<2xf32>
    %68 = vector.shape_cast %67 : vector<2xf32> to vector<2x1xf32>
    %69 = vector.broadcast %68 : vector<2x1xf32> to vector<2x8xf32>
    %70 = arith.subf %56, %69 : vector<2x8xf32>
    %71 = math.exp %70 : vector<2x8xf32>
    %cst_34 = arith.constant 0.000000e+00 : f32
    %72 = vector.broadcast %cst_34 : f32 to vector<2x8xf32>
    %73 = arith.select %66, %71, %72 : vector<2x8xi1>, vector<2x8xf32>
    %cst_35 = arith.constant dense<0.000000e+00> : vector<2xf32>
    %74 = vector.multi_reduction <add>, %73, %cst_35 [1] : vector<2x8xf32> to vector<2xf32>
    %75 = vector.shape_cast %74 : vector<2xf32> to vector<2x1xf32>
    %76 = vector.broadcast %75 : vector<2x1xf32> to vector<2x8xf32>
    %77 = arith.divf %73, %76 : vector<2x8xf32>
    %cst_36 = arith.constant dense<0.000000e+00> : vector<2x64xf32>
    %78 = tpu.matmul %77, %33, %cst_36 {dimension_numbers = #tpu.dot_dimension_numbers<[1], [0], [0], [1], [0, 0, 1, 1], [], []>} : vector<2x8xf32>, vector<8x64xf32>, vector<2x64xf32> -> vector<2x64xf32>
    %79 = vector.shape_cast %78 : vector<2x64xf32> to vector<2x8x8xf32>
    "tpu.trace_start"() <{level = 10 : i32, message = "bts,bsd->btd"}> : () -> ()
    %cst_37 = arith.constant dense<0.000000e+00> : vector<2x8x32xf32>
    %80 = tpu.matmul %79, %51, %cst_37 {dimension_numbers = #tpu.dot_dimension_numbers<[2], [1], [1], [2], [0, 0, 0, 1, 1, 2], [0], [0]>} : vector<2x8x8xf32>, vector<2x8x32xf32>, vector<2x8x32xf32> -> vector<2x8x32xf32>
    "tpu.trace_stop"() : () -> ()
    %81 = vector.shape_cast %80 : vector<2x8x32xf32> to vector<16x32xf32>
    %82 = arith.truncf %81 : vector<16x32xf32> to vector<16x32xbf16>
    %c0_38 = arith.constant 0 : index
    %c0_39 = arith.constant 0 : index
    %c0_40 = arith.constant 0 : index
    %83 = vector.load %arg9[%c0_38, %c0_39, %c0_40] : memref<2x32x32xbf16, #tpu.memory_space<vmem>>, vector<1x32x32xbf16>
    %84 = vector.shape_cast %83 : vector<1x32x32xbf16> to vector<32x32xbf16>
    %cst_41 = arith.constant dense<0.000000e+00> : vector<16x32xf32>
    %85 = tpu.matmul %82, %84, %cst_41 {dimension_numbers = #tpu.dot_dimension_numbers<[1], [0], [0], [1], [0, 0, 1, 1], [], []>} : vector<16x32xbf16>, vector<32x32xbf16>, vector<16x32xf32> -> vector<16x32xf32>
    %c0_42 = arith.constant 0 : index
    %c0_43 = arith.constant 0 : index
    %c0_44 = arith.constant 0 : index
    %86 = vector.load %arg10[%c0_42, %c0_43, %c0_44] : memref<2x1x32xf32, #tpu.memory_space<vmem>>, vector<1x1x32xf32>
    %87 = vector.shape_cast %86 : vector<1x1x32xf32> to vector<1x32xf32>
    %88 = vector.broadcast %87 : vector<1x32xf32> to vector<16x32xf32>
    %89 = arith.addf %85, %88 : vector<16x32xf32>
    %90 = vector.shape_cast %89 : vector<16x32xf32> to vector<2x8x32xf32>
    %91 = arith.addf %31, %90 : vector<2x8x32xf32>
    "tpu.trace_start"() <{level = 10 : i32, message = "bts,bsd->btd"}> : () -> ()
    %cst_45 = arith.constant dense<0.000000e+00> : vector<2x8x32xf32>
    %92 = tpu.matmul %36, %91, %cst_45 {dimension_numbers = #tpu.dot_dimension_numbers<[2], [1], [1], [2], [0, 0, 0, 1, 1, 2], [0], [0]>} : vector<2x8x8xf32>, vector<2x8x32xf32>, vector<2x8x32xf32> -> vector<2x8x32xf32>
    "tpu.trace_stop"() : () -> ()
    %93 = arith.subf %91, %92 : vector<2x8x32xf32>
    %94 = vector.shape_cast %93 : vector<2x8x32xf32> to vector<16x32xf32>
    %95 = arith.truncf %94 : vector<16x32xf32> to vector<16x32xbf16>
    %c0_46 = arith.constant 0 : index
    %c0_47 = arith.constant 0 : index
    %c0_48 = arith.constant 0 : index
    %96 = vector.load %arg11[%c0_46, %c0_47, %c0_48] : memref<2x32x32xbf16, #tpu.memory_space<vmem>>, vector<1x32x32xbf16>
    %97 = vector.shape_cast %96 : vector<1x32x32xbf16> to vector<32x32xbf16>
    %cst_49 = arith.constant dense<0.000000e+00> : vector<16x32xf32>
    %98 = tpu.matmul %95, %97, %cst_49 {dimension_numbers = #tpu.dot_dimension_numbers<[1], [0], [0], [1], [0, 0, 1, 1], [], []>} : vector<16x32xbf16>, vector<32x32xbf16>, vector<16x32xf32> -> vector<16x32xf32>
    %cst_50 = arith.constant 0.000000e+00 : f32
    %99 = vector.broadcast %cst_50 : f32 to vector<16x32xf32>
    %100 = arith.maximumf %98, %99 : vector<16x32xf32>
    %101 = arith.truncf %100 : vector<16x32xf32> to vector<16x32xbf16>
    %c0_51 = arith.constant 0 : index
    %c0_52 = arith.constant 0 : index
    %c0_53 = arith.constant 0 : index
    %102 = vector.load %arg12[%c0_51, %c0_52, %c0_53] : memref<2x32x32xbf16, #tpu.memory_space<vmem>>, vector<1x32x32xbf16>
    %103 = vector.shape_cast %102 : vector<1x32x32xbf16> to vector<32x32xbf16>
    %cst_54 = arith.constant dense<0.000000e+00> : vector<16x32xf32>
    %104 = tpu.matmul %101, %103, %cst_54 {dimension_numbers = #tpu.dot_dimension_numbers<[1], [0], [0], [1], [0, 0, 1, 1], [], []>} : vector<16x32xbf16>, vector<32x32xbf16>, vector<16x32xf32> -> vector<16x32xf32>
    %105 = vector.shape_cast %104 : vector<16x32xf32> to vector<2x8x32xf32>
    %106 = arith.addf %93, %105 : vector<2x8x32xf32>
    "tpu.trace_start"() <{level = 10 : i32, message = "bts,bsd->btd"}> : () -> ()
    %cst_55 = arith.constant dense<0.000000e+00> : vector<2x8x32xf32>
    %107 = tpu.matmul %36, %106, %cst_55 {dimension_numbers = #tpu.dot_dimension_numbers<[2], [1], [1], [2], [0, 0, 0, 1, 1, 2], [0], [0]>} : vector<2x8x8xf32>, vector<2x8x32xf32>, vector<2x8x32xf32> -> vector<2x8x32xf32>
    "tpu.trace_stop"() : () -> ()
    %108 = arith.subf %106, %107 : vector<2x8x32xf32>
    %109 = vector.shape_cast %108 : vector<2x8x32xf32> to vector<16x32xf32>
    %110 = arith.truncf %109 : vector<16x32xf32> to vector<16x32xbf16>
    %c1_56 = arith.constant 1 : index
    %c0_57 = arith.constant 0 : index
    %c0_58 = arith.constant 0 : index
    %111 = vector.load %arg7[%c1_56, %c0_57, %c0_58] : memref<2x32x96xbf16, #tpu.memory_space<vmem>>, vector<1x32x96xbf16>
    %112 = vector.shape_cast %111 : vector<1x32x96xbf16> to vector<32x96xbf16>
    %cst_59 = arith.constant dense<0.000000e+00> : vector<16x96xf32>
    %113 = tpu.matmul %110, %112, %cst_59 {dimension_numbers = #tpu.dot_dimension_numbers<[1], [0], [0], [1], [0, 0, 1, 1], [], []>} : vector<16x32xbf16>, vector<32x96xbf16>, vector<16x96xf32> -> vector<16x96xf32>
    %c1_60 = arith.constant 1 : index
    %c0_61 = arith.constant 0 : index
    %c0_62 = arith.constant 0 : index
    %114 = vector.load %arg8[%c1_60, %c0_61, %c0_62] : memref<2x1x96xf32, #tpu.memory_space<vmem>>, vector<1x1x96xf32>
    %115 = vector.shape_cast %114 : vector<1x1x96xf32> to vector<1x96xf32>
    %116 = vector.broadcast %115 : vector<1x96xf32> to vector<16x96xf32>
    %117 = arith.addf %113, %116 : vector<16x96xf32>
    %118 = vector.extract_strided_slice %117 {offsets = [0, 0], sizes = [16, 32], strides = [1, 1]} : vector<16x96xf32> to vector<16x32xf32>
    %119 = vector.shape_cast %118 : vector<16x32xf32> to vector<2x8x32xf32>
    %120 = vector.extract_strided_slice %117 {offsets = [0, 32], sizes = [16, 32], strides = [1, 1]} : vector<16x96xf32> to vector<16x32xf32>
    %121 = vector.shape_cast %120 : vector<16x32xf32> to vector<2x8x32xf32>
    %122 = vector.extract_strided_slice %117 {offsets = [0, 64], sizes = [16, 32], strides = [1, 1]} : vector<16x96xf32> to vector<16x32xf32>
    %123 = vector.shape_cast %122 : vector<16x32xf32> to vector<2x8x32xf32>
    "tpu.trace_start"() <{level = 10 : i32, message = "bld,bmd->blm"}> : () -> ()
    %cst_63 = arith.constant dense<0.000000e+00> : vector<2x8x8xf32>
    %124 = tpu.matmul %119, %121, %cst_63 {dimension_numbers = #tpu.dot_dimension_numbers<[2], [2], [1], [1], [0, 0, 0, 1, 1, 1], [0], [0]>} : vector<2x8x32xf32>, vector<2x8x32xf32>, vector<2x8x8xf32> -> vector<2x8x8xf32>
    "tpu.trace_stop"() : () -> ()
    %125 = vector.shape_cast %124 : vector<2x8x8xf32> to vector<2x64xf32>
    %cst_64 = arith.constant dense<0.000000e+00> : vector<2x8xf32>
    %126 = tpu.matmul %125, %32, %cst_64 {dimension_numbers = #tpu.dot_dimension_numbers<[1], [0], [0], [1], [0, 0, 1, 1], [], []>} : vector<2x64xf32>, vector<64x8xf32>, vector<2x8xf32> -> vector<2x8xf32>
    %cst_65 = arith.constant 3.125000e-02 : f32
    %127 = vector.broadcast %cst_65 : f32 to vector<2x8xf32>
    %128 = arith.mulf %126, %127 : vector<2x8xf32>
    %cst_66 = arith.constant dense<0xFF800000> : vector<2xf32>
    %129 = vector.multi_reduction <maximumf>, %128, %cst_66 [1] : vector<2x8xf32> to vector<2xf32>
    %130 = vector.shape_cast %129 : vector<2xf32> to vector<2x1xf32>
    %131 = vector.broadcast %130 : vector<2x1xf32> to vector<2x8xf32>
    %132 = arith.cmpf oge, %128, %131 : vector<2x8xf32>
    %cst_67 = arith.constant 0xFF800000 : f32
    %133 = vector.broadcast %cst_67 : f32 to vector<2x8xf32>
    %134 = arith.select %132, %133, %128 : vector<2x8xi1>, vector<2x8xf32>
    %cst_68 = arith.constant dense<0xFF800000> : vector<2xf32>
    %135 = vector.multi_reduction <maximumf>, %134, %cst_68 [1] : vector<2x8xf32> to vector<2xf32>
    %136 = vector.shape_cast %135 : vector<2xf32> to vector<2x1xf32>
    %137 = vector.broadcast %136 : vector<2x1xf32> to vector<2x8xf32>
    %138 = arith.cmpf oge, %128, %137 : vector<2x8xf32>
    %cst_69 = arith.constant dense<0xFF800000> : vector<2xf32>
    %139 = vector.multi_reduction <maximumf>, %128, %cst_69 [1] : vector<2x8xf32> to vector<2xf32>
    %140 = vector.shape_cast %139 : vector<2xf32> to vector<2x1xf32>
    %141 = vector.broadcast %140 : vector<2x1xf32> to vector<2x8xf32>
    %142 = arith.subf %128, %141 : vector<2x8xf32>
    %143 = math.exp %142 : vector<2x8xf32>
    %cst_70 = arith.constant 0.000000e+00 : f32
    %144 = vector.broadcast %cst_70 : f32 to vector<2x8xf32>
    %145 = arith.select %138, %143, %144 : vector<2x8xi1>, vector<2x8xf32>
    %cst_71 = arith.constant dense<0.000000e+00> : vector<2xf32>
    %146 = vector.multi_reduction <add>, %145, %cst_71 [1] : vector<2x8xf32> to vector<2xf32>
    %147 = vector.shape_cast %146 : vector<2xf32> to vector<2x1xf32>
    %148 = vector.broadcast %147 : vector<2x1xf32> to vector<2x8xf32>
    %149 = arith.divf %145, %148 : vector<2x8xf32>
    %cst_72 = arith.constant dense<0.000000e+00> : vector<2x64xf32>
    %150 = tpu.matmul %149, %33, %cst_72 {dimension_numbers = #tpu.dot_dimension_numbers<[1], [0], [0], [1], [0, 0, 1, 1], [], []>} : vector<2x8xf32>, vector<8x64xf32>, vector<2x64xf32> -> vector<2x64xf32>
    %151 = vector.shape_cast %150 : vector<2x64xf32> to vector<2x8x8xf32>
    "tpu.trace_start"() <{level = 10 : i32, message = "bts,bsd->btd"}> : () -> ()
    %cst_73 = arith.constant dense<0.000000e+00> : vector<2x8x32xf32>
    %152 = tpu.matmul %151, %123, %cst_73 {dimension_numbers = #tpu.dot_dimension_numbers<[2], [1], [1], [2], [0, 0, 0, 1, 1, 2], [0], [0]>} : vector<2x8x8xf32>, vector<2x8x32xf32>, vector<2x8x32xf32> -> vector<2x8x32xf32>
    "tpu.trace_stop"() : () -> ()
    %153 = vector.shape_cast %152 : vector<2x8x32xf32> to vector<16x32xf32>
    %154 = arith.truncf %153 : vector<16x32xf32> to vector<16x32xbf16>
    %c1_74 = arith.constant 1 : index
    %c0_75 = arith.constant 0 : index
    %c0_76 = arith.constant 0 : index
    %155 = vector.load %arg9[%c1_74, %c0_75, %c0_76] : memref<2x32x32xbf16, #tpu.memory_space<vmem>>, vector<1x32x32xbf16>
    %156 = vector.shape_cast %155 : vector<1x32x32xbf16> to vector<32x32xbf16>
    %cst_77 = arith.constant dense<0.000000e+00> : vector<16x32xf32>
    %157 = tpu.matmul %154, %156, %cst_77 {dimension_numbers = #tpu.dot_dimension_numbers<[1], [0], [0], [1], [0, 0, 1, 1], [], []>} : vector<16x32xbf16>, vector<32x32xbf16>, vector<16x32xf32> -> vector<16x32xf32>
    %c1_78 = arith.constant 1 : index
    %c0_79 = arith.constant 0 : index
    %c0_80 = arith.constant 0 : index
    %158 = vector.load %arg10[%c1_78, %c0_79, %c0_80] : memref<2x1x32xf32, #tpu.memory_space<vmem>>, vector<1x1x32xf32>
    %159 = vector.shape_cast %158 : vector<1x1x32xf32> to vector<1x32xf32>
    %160 = vector.broadcast %159 : vector<1x32xf32> to vector<16x32xf32>
    %161 = arith.addf %157, %160 : vector<16x32xf32>
    %162 = vector.shape_cast %161 : vector<16x32xf32> to vector<2x8x32xf32>
    %163 = arith.addf %108, %162 : vector<2x8x32xf32>
    "tpu.trace_start"() <{level = 10 : i32, message = "bts,bsd->btd"}> : () -> ()
    %cst_81 = arith.constant dense<0.000000e+00> : vector<2x8x32xf32>
    %164 = tpu.matmul %36, %163, %cst_81 {dimension_numbers = #tpu.dot_dimension_numbers<[2], [1], [1], [2], [0, 0, 0, 1, 1, 2], [0], [0]>} : vector<2x8x8xf32>, vector<2x8x32xf32>, vector<2x8x32xf32> -> vector<2x8x32xf32>
    "tpu.trace_stop"() : () -> ()
    %165 = arith.subf %163, %164 : vector<2x8x32xf32>
    %166 = vector.shape_cast %165 : vector<2x8x32xf32> to vector<16x32xf32>
    %167 = arith.truncf %166 : vector<16x32xf32> to vector<16x32xbf16>
    %c1_82 = arith.constant 1 : index
    %c0_83 = arith.constant 0 : index
    %c0_84 = arith.constant 0 : index
    %168 = vector.load %arg11[%c1_82, %c0_83, %c0_84] : memref<2x32x32xbf16, #tpu.memory_space<vmem>>, vector<1x32x32xbf16>
    %169 = vector.shape_cast %168 : vector<1x32x32xbf16> to vector<32x32xbf16>
    %cst_85 = arith.constant dense<0.000000e+00> : vector<16x32xf32>
    %170 = tpu.matmul %167, %169, %cst_85 {dimension_numbers = #tpu.dot_dimension_numbers<[1], [0], [0], [1], [0, 0, 1, 1], [], []>} : vector<16x32xbf16>, vector<32x32xbf16>, vector<16x32xf32> -> vector<16x32xf32>
    %cst_86 = arith.constant 0.000000e+00 : f32
    %171 = vector.broadcast %cst_86 : f32 to vector<16x32xf32>
    %172 = arith.maximumf %170, %171 : vector<16x32xf32>
    %173 = arith.truncf %172 : vector<16x32xf32> to vector<16x32xbf16>
    %c1_87 = arith.constant 1 : index
    %c0_88 = arith.constant 0 : index
    %c0_89 = arith.constant 0 : index
    %174 = vector.load %arg12[%c1_87, %c0_88, %c0_89] : memref<2x32x32xbf16, #tpu.memory_space<vmem>>, vector<1x32x32xbf16>
    %175 = vector.shape_cast %174 : vector<1x32x32xbf16> to vector<32x32xbf16>
    %cst_90 = arith.constant dense<0.000000e+00> : vector<16x32xf32>
    %176 = tpu.matmul %173, %175, %cst_90 {dimension_numbers = #tpu.dot_dimension_numbers<[1], [0], [0], [1], [0, 0, 1, 1], [], []>} : vector<16x32xbf16>, vector<32x32xbf16>, vector<16x32xf32> -> vector<16x32xf32>
    %177 = vector.shape_cast %176 : vector<16x32xf32> to vector<2x8x32xf32>
    %178 = arith.addf %165, %177 : vector<2x8x32xf32>
    "tpu.trace_start"() <{level = 10 : i32, message = "bts,bsd->btd"}> : () -> ()
    %cst_91 = arith.constant dense<0.000000e+00> : vector<2x8x32xf32>
    %179 = tpu.matmul %36, %178, %cst_91 {dimension_numbers = #tpu.dot_dimension_numbers<[2], [1], [1], [2], [0, 0, 0, 1, 1, 2], [0], [0]>} : vector<2x8x8xf32>, vector<2x8x32xf32>, vector<2x8x32xf32> -> vector<2x8x32xf32>
    "tpu.trace_stop"() : () -> ()
    %180 = arith.subf %178, %179 : vector<2x8x32xf32>
    %cst_92 = arith.constant dense<0.000000e+00> : vector<2x8xf32>
    %181 = vector.multi_reduction <add>, %180, %cst_92 [2] : vector<2x8x32xf32> to vector<2x8xf32>
    %182 = vector.shape_cast %181 : vector<2x8xf32> to vector<2x8x1xf32>
    %cst_93 = arith.constant 3.200000e+01 : f32
    %183 = vector.broadcast %cst_93 : f32 to vector<2x8x1xf32>
    %184 = arith.divf %182, %183 : vector<2x8x1xf32>
    %185 = vector.broadcast %184 : vector<2x8x1xf32> to vector<2x8x32xf32>
    %186 = arith.subf %180, %185 : vector<2x8x32xf32>
    %187 = vector.broadcast %184 : vector<2x8x1xf32> to vector<2x8x32xf32>
    %188 = arith.subf %180, %187 : vector<2x8x32xf32>
    %189 = arith.mulf %186, %188 : vector<2x8x32xf32>
    %cst_94 = arith.constant dense<0.000000e+00> : vector<2x8xf32>
    %190 = vector.multi_reduction <add>, %189, %cst_94 [2] : vector<2x8x32xf32> to vector<2x8xf32>
    %191 = vector.shape_cast %190 : vector<2x8xf32> to vector<2x8x1xf32>
    %cst_95 = arith.constant 3.200000e+01 : f32
    %192 = vector.broadcast %cst_95 : f32 to vector<2x8x1xf32>
    %193 = arith.divf %191, %192 : vector<2x8x1xf32>
    %194 = vector.broadcast %184 : vector<2x8x1xf32> to vector<2x8x32xf32>
    %195 = arith.subf %180, %194 : vector<2x8x32xf32>
    %cst_96 = arith.constant 9.99999974E-6 : f32
    %196 = vector.broadcast %cst_96 : f32 to vector<2x8x1xf32>
    %197 = arith.addf %193, %196 : vector<2x8x1xf32>
    %198 = math.rsqrt %197 : vector<2x8x1xf32>
    %199 = vector.broadcast %198 : vector<2x8x1xf32> to vector<2x8x32xf32>
    %200 = arith.mulf %195, %199 : vector<2x8x32xf32>
    %c0_97 = arith.constant 0 : index
    %c0_98 = arith.constant 0 : index
    %201 = vector.load %arg13[%c0_97, %c0_98] : memref<1x32xf32, #tpu.memory_space<vmem>>, vector<1x32xf32>
    %202 = vector.shape_cast %201 : vector<1x32xf32> to vector<1x1x32xf32>
    %203 = vector.broadcast %202 : vector<1x1x32xf32> to vector<2x8x32xf32>
    %204 = arith.mulf %200, %203 : vector<2x8x32xf32>
    %c0_99 = arith.constant 0 : index
    %c0_100 = arith.constant 0 : index
    %205 = vector.load %arg14[%c0_99, %c0_100] : memref<1x32xf32, #tpu.memory_space<vmem>>, vector<1x32xf32>
    %206 = vector.shape_cast %205 : vector<1x32xf32> to vector<1x1x32xf32>
    %207 = vector.broadcast %206 : vector<1x1x32xf32> to vector<2x8x32xf32>
    %208 = arith.addf %204, %207 : vector<2x8x32xf32>
    %cst_101 = arith.constant dense<0.000000e+00> : vector<2x32xf32>
    %209 = vector.multi_reduction <add>, %208, %cst_101 [1] : vector<2x8x32xf32> to vector<2x32xf32>
    %210 = vector.shape_cast %209 : vector<2x32xf32> to vector<2x1x32xf32>
    %cst_102 = arith.constant 8.000000e+00 : f32
    %211 = vector.broadcast %cst_102 : f32 to vector<2x1x32xf32>
    %212 = arith.divf %210, %211 : vector<2x1x32xf32>
    %213 = vector.broadcast %212 : vector<2x1x32xf32> to vector<2x8x32xf32>
    %214 = arith.subf %208, %213 : vector<2x8x32xf32>
    %215 = vector.extract_strided_slice %214 {offsets = [0, 7, 0], sizes = [2, 1, 32], strides = [1, 1, 1]} : vector<2x8x32xf32> to vector<2x1x32xf32>
    %216 = vector.shape_cast %215 : vector<2x1x32xf32> to vector<2x32xf32>
    %cst_103 = arith.constant 0.000000e+00 : f32
    %217 = vector.broadcast %cst_103 : f32 to vector<2x32xf32>
    %218 = arith.maximumf %216, %217 : vector<2x32xf32>
    %219 = arith.truncf %218 : vector<2x32xf32> to vector<2x32xbf16>
    %c0_104 = arith.constant 0 : index
    %c0_105 = arith.constant 0 : index
    %220 = vector.load %arg15[%c0_104, %c0_105] : memref<32x3xbf16, #tpu.memory_space<vmem>>, vector<32x3xbf16>
    %cst_106 = arith.constant dense<0.000000e+00> : vector<2x3xf32>
    %221 = tpu.matmul %219, %220, %cst_106 {dimension_numbers = #tpu.dot_dimension_numbers<[1], [0], [0], [1], [0, 0, 1, 1], [], []>} : vector<2x32xbf16>, vector<32x3xbf16>, vector<2x3xf32> -> vector<2x3xf32>
    %c0_107 = arith.constant 0 : index
    %c0_108 = arith.constant 0 : index
    %222 = vector.load %arg16[%c0_107, %c0_108] : memref<1x3xf32, #tpu.memory_space<vmem>>, vector<1x3xf32>
    %223 = vector.broadcast %222 : vector<1x3xf32> to vector<2x3xf32>
    %224 = arith.addf %221, %223 : vector<2x3xf32>
    %c0_109 = arith.constant 0 : index
    %c0_110 = arith.constant 0 : index
    %225 = vector.load %arg17[%c0_109, %c0_110] : memref<2x3xf32, #tpu.memory_space<vmem>>, vector<2x3xf32>
    tpu.vector_store %arg17[%c0_109, %c0_110], %224 {strides = array<i32>} : memref<2x3xf32, #tpu.memory_space<vmem>>, vector<2x3xf32>,
    return
  }
  func.func @transform_0(%arg0: i32) -> (i32, i32, i32) {
    %c0_i32 = arith.constant 0 : i32
    %c0_i32_0 = arith.constant 0 : i32
    %c0_i32_1 = arith.constant 0 : i32
    return %arg0, %c0_i32, %c0_i32_0 : i32, i32, i32
  }
  func.func @transform_1(%arg0: i32) -> (i32, i32) {
    %c0_i32 = arith.constant 0 : i32
    %c0_i32_0 = arith.constant 0 : i32
    %c0_i32_1 = arith.constant 0 : i32
    return %c0_i32, %c0_i32_0 : i32, i32
  }
  func.func @transform_2(%arg0: i32) -> (i32, i32) {
    %c0_i32 = arith.constant 0 : i32
    %c0_i32_0 = arith.constant 0 : i32
    %c0_i32_1 = arith.constant 0 : i32
    return %c0_i32, %c0_i32_0 : i32, i32
  }
  func.func @transform_3(%arg0: i32) -> (i32, i32) {
    %c0_i32 = arith.constant 0 : i32
    %c0_i32_0 = arith.constant 0 : i32
    %c0_i32_1 = arith.constant 0 : i32
    return %c0_i32, %c0_i32_0 : i32, i32
  }
  func.func @transform_4(%arg0: i32) -> (i32, i32, i32) {
    %c0_i32 = arith.constant 0 : i32
    %c0_i32_0 = arith.constant 0 : i32
    %c0_i32_1 = arith.constant 0 : i32
    %c0_i32_2 = arith.constant 0 : i32
    return %c0_i32, %c0_i32_0, %c0_i32_1 : i32, i32, i32
  }
  func.func @transform_5(%arg0: i32) -> (i32, i32) {
    %c0_i32 = arith.constant 0 : i32
    %c0_i32_0 = arith.constant 0 : i32
    %c0_i32_1 = arith.constant 0 : i32
    return %c0_i32, %c0_i32_0 : i32, i32
  }
  func.func @transform_6(%arg0: i32) -> (i32, i32, i32) {
    %c0_i32 = arith.constant 0 : i32
    %c0_i32_0 = arith.constant 0 : i32
    %c0_i32_1 = arith.constant 0 : i32
    %c0_i32_2 = arith.constant 0 : i32
    return %c0_i32, %c0_i32_0, %c0_i32_1 : i32, i32, i32
  }
  func.func @transform_7(%arg0: i32) -> (i32, i32, i32) {
    %c0_i32 = arith.constant 0 : i32
    %c0_i32_0 = arith.constant 0 : i32
    %c0_i32_1 = arith.constant 0 : i32
    %c0_i32_2 = arith.constant 0 : i32
    return %c0_i32, %c0_i32_0, %c0_i32_1 : i32, i32, i32
  }
  func.func @transform_8(%arg0: i32) -> (i32, i32, i32) {
    %c0_i32 = arith.constant 0 : i32
    %c0_i32_0 = arith.constant 0 : i32
    %c0_i32_1 = arith.constant 0 : i32
    %c0_i32_2 = arith.constant 0 : i32
    return %c0_i32, %c0_i32_0, %c0_i32_1 : i32, i32, i32
  }
  func.func @transform_9(%arg0: i32) -> (i32, i32, i32) {
    %c0_i32 = arith.constant 0 : i32
    %c0_i32_0 = arith.constant 0 : i32
    %c0_i32_1 = arith.constant 0 : i32
    %c0_i32_2 = arith.constant 0 : i32
    return %c0_i32, %c0_i32_0, %c0_i32_1 : i32, i32, i32
  }
  func.func @transform_10(%arg0: i32) -> (i32, i32, i32) {
    %c0_i32 = arith.constant 0 : i32
    %c0_i32_0 = arith.constant 0 : i32
    %c0_i32_1 = arith.constant 0 : i32
    %c0_i32_2 = arith.constant 0 : i32
    return %c0_i32, %c0_i32_0, %c0_i32_1 : i32, i32, i32
  }
  func.func @transform_11(%arg0: i32) -> (i32, i32, i32) {
    %c0_i32 = arith.constant 0 : i32
    %c0_i32_0 = arith.constant 0 : i32
    %c0_i32_1 = arith.constant 0 : i32
    %c0_i32_2 = arith.constant 0 : i32
    return %c0_i32, %c0_i32_0, %c0_i32_1 : i32, i32, i32
  }
  func.func @transform_12(%arg0: i32) -> (i32, i32) {
    %c0_i32 = arith.constant 0 : i32
    %c0_i32_0 = arith.constant 0 : i32
    %c0_i32_1 = arith.constant 0 : i32
    return %c0_i32, %c0_i32_0 : i32, i32
  }
  func.func @transform_13(%arg0: i32) -> (i32, i32) {
    %c0_i32 = arith.constant 0 : i32
    %c0_i32_0 = arith.constant 0 : i32
    %c0_i32_1 = arith.constant 0 : i32
    return %c0_i32, %c0_i32_0 : i32, i32
  }
  func.func @transform_14(%arg0: i32) -> (i32, i32) {
    %c0_i32 = arith.constant 0 : i32
    %c0_i32_0 = arith.constant 0 : i32
    %c0_i32_1 = arith.constant 0 : i32
    return %c0_i32, %c0_i32_0 : i32, i32
  }
  func.func @transform_15(%arg0: i32) -> (i32, i32) {
    %c0_i32 = arith.constant 0 : i32
    %c0_i32_0 = arith.constant 0 : i32
    %c0_i32_1 = arith.constant 0 : i32
    return %c0_i32, %c0_i32_0 : i32, i32
  }
  func.func @transform_16(%arg0: i32) -> (i32, i32) {
    %c0_i32 = arith.constant 0 : i32
    %c0_i32_0 = arith.constant 0 : i32
    return %arg0, %c0_i32 : i32, i32
  }
}

</mosaic_0001>

<bundles_post_ra>
// kernel: qnetwork_forward.1
= control target key start
LH: loop header
LB: loop body
LE: loop exit
PB: predicated region body
PF: predicated region fallthrough
CT: control target
= control target key end

     0   :  { %s3926_s0 = inlined_call_operand.vmem [shape: f32[2,8,8], index: 0, kind: input, shape index: {}]   ;;  %s3927_s1 = inlined_call_operand.vmem [shape: f32[64,8], index: 1, kind: input, shape index: {}]   ;;  %s3928_s2 = inlined_call_operand.vmem [shape: f32[8,64], index: 2, kind: input, shape index: {}]   ;;  %s3929_s3 = inlined_call_operand.vmem [shape: f32[8,8], index: 3, kind: input, shape index: {}]   ;;  %s3930_s4 = inlined_call_operand.vmem [shape: bf16[3,4,32], index: 4, kind: input, shape index: {}]   ;;  %s3931_s5 = inlined_call_operand.vmem [shape: bf16[4,32], index: 5, kind: input, shape index: {}]   ;;  %s3932_s6 = inlined_call_operand.vmem [shape: bf16[2,32,96], index: 6, kind: input, shape index: {}]   ;;  %s3933_s7 = inlined_call_operand.vmem [shape: f32[2,1,96], index: 7, kind: input, shape index: {}]   ;;  %s3934_s8 = inlined_call_operand.vmem [shape: bf16[2,32,32], index: 8, kind: input, shape index: {}]   ;;  %s3935_s9 = inlined_call_operand.vmem [shape: f32[2,1,32], index: 9, kind: input, shape index: {}]   ;;  %s3936_s10 = inlined_call_operand.vmem [shape: bf16[2,32,32], index: 10, kind: input, shape index: {}]   ;;  %s3937_s11 = inlined_call_operand.vmem [shape: bf16[2,32,32], index: 11, kind: input, shape index: {}]   ;;  %s3938_s12 = inlined_call_operand.vmem [shape: f32[1,32], index: 12, kind: input, shape index: {}]   ;;  %s3939_s13 = inlined_call_operand.vmem [shape: f32[1,32], index: 13, kind: input, shape index: {}]   ;;  %s3940_s14 = inlined_call_operand.vmem [shape: bf16[32,3], index: 14, kind: input, shape index: {}]   ;;  %s3941_s15 = inlined_call_operand.vmem [shape: f32[1,3], index: 15, kind: input, shape index: {}]   ;;  %s3942_s16 = inlined_call_operand.hbm [shape: f32[2,3], index: 16, kind: output, shape index: {}]  }
   0x1   :  { %3944 = sst [smem:[#allocation5_spill]] %s3926_s0 }
   0x2   :  { %s3945_s23 = sld [smem:[#allocation5_spill]]  ;;  %v2850_v2 = vld [vmem:[%s3930_s4 + $0x2] sm:$0x3]  ;;  %v3357_v4 = vmov 0.0   ;;  %v66_v5 = vld [vmem:[%s3930_s4] sm:$0x3] }
   0x3   :  { %3021 = vmatprep.subr.bf16.mxu0 %v3357_v4  ;;  %3045 = vmatprep.subr.bf16.mxu1 %v3357_v4  ;;  %v3303_v6 = vld [vmem:[%s3932_s6] sm:$0xff]   ;;  %vm75_vm0 = vcmask 1041408   ;;  %s3358_s17 = smov 124   ;;  %vm3359_vm1 = vmmov 0   ;;  %vm71_vm2 = vcmask 31744  }
   0x4   :  { %v77_v9 = vsel %vm75_vm0, %v2850_v2, 0  ;;  %3023 = vmatprep.mubr.msk.bf16.mxu0 %vm3359_vm1, %v3357_v4  ;;  %v124_v10 = vsel %vm75_vm0, %v66_v5, 0  ;;  %3046 = vmatpush3.bf16.msra.mxu1 %v3303_v6  ;;  %v2853_v11 = vld [vmem:[%s3930_s4 + $0x4] sm:$0x3] }
   0x5   :  { %3022 = vmatpush3.bf16.msra.mxu0 %v77_v9  ;;  %3047 = vmatprep.subr.bf16.mxu1 %v3357_v4 }
   0x6   :  { %3027 = vmatprep.subr.bf16.mxu0 %v3357_v4  ;;  %3049 = vmatprep.mubr.msk.bf16.mxu1 %vm3359_vm1, %v3357_v4 }
   0x8   :  { %v55_v0 = vld [vmem:[%s3945_s23] sm:$0xff]  ;;  %v56_v1 = vld [vmem:[%s3945_s23 + $0x8] sm:$0xff] }
   0x9   :  { %v70_v3 = vpack.c.bf16 %v56_v1, %v55_v0  ;;  %v60_v7 = vrot.slane %v56_v1, 7  ;;  %v59_v8 = vrot.slane %v55_v0, 7 }
   0xb   :  { %228 = vrot.lane.b32.xlu0 %v70_v3, %s3358_s17  ;;  %3024 = vmatmul.mubr.msk.bf16.vlgmr.msra.gmra.mrb[0].mxu0 %vm71_vm2, %v70_v3  ;;  %v67_v12 = vpack.c.bf16 %v60_v7, %v59_v8 }
   0xc   :  { %3028 = vmatpush3.bf16.msra.mxu0 %v124_v10  ;;  %3029 = vmatprep.mubr.msk.bf16.mxu0 %vm3359_vm1, %v3357_v4 }
   0xd   :  { %3033 = vmatprep.subr.bf16.mxu0 %v3357_v4 }
   0xe   :  { %21 = vsyncpa [#allocation3], 0  ;;  %v181_v13 = vsel %vm75_vm0, %v2853_v11, 0  ;;  %v167_v14 = vrot.slane %v55_v0, 1  ;;  %v168_v15 = vrot.slane %v56_v1, 1  ;;  %v3304_v20 = vld [vmem:[%s3932_s6 + $0x8] sm:$0xff]   ;;  %v516_v38 = vlaneseq }
   0xf   :  { %v226_v16 = vld [vmem:[%s3931_s5] sm:$0x3]  ;;  %3048 = vmatpush3.bf16.msra.mxu1 %v3304_v20  ;;  %vm313_vm3 = vcmask 261120   ;;  %s3360_s24 = smov 96   ;;  %v3361_v35 = vmov 0.0|0.0   ;;  %v280_v40 = vld [vmem:[%s3927_s1 + $0x8] sm:$0xff] }
  0x10   :  { %v176_v17 = vpack.c.bf16 %v168_v15, %v167_v14  ;;  %v234_v18 = vsel %vm75_vm0, %v226_v16, 0  ;;  %3058 = vmatprep.subr.mxu1 %v3357_v4  ;;  %v2856_v26 = vld [vmem:[%s3933_s7] ss:$0 sm:$0xff]  ;;  %v3362_v36 = vmov 1983009808   ;;  %v517_v43 = vshrl.u32 %v516_v38, 7 }
  0x11   :  { %v514_v37 = vunpack.c.l.s4 %v3362_v36  ;;  %v279_v39 = vld [vmem:[%s3927_s1] sm:$0xff]  ;;  %v3363_v44 = vmov 1934713408   ;;  %v281_v46 = vld [vmem:[%s3927_s1 + $0x10] sm:$0xff]  ;;  %v282_v47 = vld [vmem:[%s3927_s1 + $0x18] sm:$0xff]  ;;  %s3364_s25 = smov 16  }
  0x12   :  { %v3554_v41 = vpack.c.bf16 %v280_v40, %v279_v39  ;;  %v545_v45 = vunpack.c.l.s4 %v3363_v44  ;;  %v3564_v48 = vpack.c.bf16 %v282_v47, %v281_v46  ;;  %v283_v54 = vld [vmem:[%s3927_s1 + $0x20] sm:$0xff]  ;;  %v284_v55 = vld [vmem:[%s3927_s1 + $0x28] sm:$0xff]  ;;  %v285_v3 = vld [vmem:[%s3927_s1 + $0x30] sm:$0xff]  ;;  %s3365_s26 = smov 8   ;;  %s3367_s27 = smov 24   ;;  %vm606_vm4 = vcmask 64512  }
  0x13   :  { %v515_v42 = vunpack.c.0.s8 %v514_v37  ;;  %v3577_v57 = vpack.c.bf16 %v284_v55, %v283_v54  ;;  %v286_v5 = vld [vmem:[%s3927_s1 + $0x38] sm:$0xff]  ;;  %s3366_s1 = smov 32   ;;  %s3368_s28 = smov 48   ;;  %vm608_vm5 = vcmask 130048   ;;  %vm610_vm6 = vcmask 195584  }
  0x14   :  { %v546_v50 = vunpack.c.0.s8 %v545_v45  ;;  %v3594_v6 = vpack.c.bf16 %v286_v5, %v285_v3  ;;  %s3369_s29 = smov 40   ;;  %s3370_s30 = smov 56   ;;  %vm613_vm7 = vcmask 326656   ;;  %vm615_vm8 = vcmask 392192  }
  0x15   :  { %v3566_v49 = vsub.s32 %v515_v42, %v517_v43  ;;  %vm617_vm9 = vcmask 457728   ;;  %vm619_vm10 = vcmask 523264   ;;  %vm694_vm11 = vcmask 58368   ;;  %s3371_s18 = smov 112   ;;  %s3372_s19 = smov 120  }
  0x16   :  { %v3582_v61 = vsub.s32 %v546_v50, %v517_v43  ;;  %s3374_s20 = smov 88   ;;  %s3375_s21 = smov 80   ;;  %vm2776_vm0 = vcmask 1041409  }
  0x17   :  { %3030 = vmatmul.mubr.msk.bf16.vlgmr.msra.gmra.mrb[0].mxu0 %vm71_vm2, %v67_v12  ;;  %s3376_s4 = smov 72   ;;  %s3377_s22 = smov 64  }
  0x18   :  { %3034 = vmatpush3.bf16.msra.mxu0 %v181_v13  ;;  %3035 = vmatprep.mubr.msk.bf16.mxu0 %vm3359_vm1, %v3357_v4  ;;  %s3378_s17 = smov [#allocation2]  }
  0x19   :  { %3039 = vmatprep.subr.bf16.mxu0 %v3357_v4 }
  0x23   :  { %3036 = vmatmul.mubr.msk.bf16.vlgmr.msra.gmra.mrb[0].mxu0 %vm71_vm2, %v176_v17 }
  0x24   :  { %3040 = vmatpush3.bf16.msra.mxu0 %v234_v18  ;;  %3041 = vmatprep.mubr.msk.bf16.mxu0 %vm3359_vm1, %v3357_v4 }
  0x25   :  { %3053 = vmatprep.subr.mxu0 %v3357_v4 }
  0x7d   :  { %v229_v19 = vpop.permute.xlu0 %228 }
  0x7e   :  { %3042 = vmatmul.mubr.msk.bf16.vlgmr.msra.gmra.mrb[0].mxu0 %vm71_vm2, %v229_v19 }
  0x7f   :  { %3055 = vmatprep.mubr.msk.f32.mxu0 %vm3359_vm1, %v3357_v4 }
 0x151   :  { %v3516_v21 = vpop.f32.mrb[0].mxu0 }
 0x152   :  { %v3043_v22 = vpop.f32.mrb[1].mxu0 }
 0x153   :  { %v3518_v23 = vpop.f32.mrb[2].mxu0 }
 0x154   :  { %v289_v24 = vpack.c.bf16 %v3518_v23, %v3516_v21  ;;  %v3044_v25 = vpop.f32.mrb[3].mxu0 }
 0x156   :  { %3050 = vmatmul.mubr.msk.bf16.vlgmr.msra.gmra.mrb[0].mxu1 %vm313_vm3, %v289_v24 }
 0x157   :  { %3060 = vmatprep.mubr.msk.f32.mxu1 %vm3359_vm1, %v3357_v4 }
 0x229   :  { %v351_v27 = vpop.f32.mrb[0].mxu1 }
 0x22a   :  { %v3528_v28 = vadd.f32 %v2856_v26, %v351_v27  ;;  %v3051_v29 = vpop.f32.mrb[1].mxu1 }
 0x22b   :  { %v354_v30 = vpop.f32.mrb[2].mxu1 }
 0x22c   :  { %v3530_v31 = vadd.f32 %v2856_v26, %v354_v30  ;;  %359 = vrot.lane.b32.xlu0 %v3528_v28, %s3360_s24  ;;  %v3052_v32 = vpop.f32.mrb[3].mxu1 }
 0x22e   :  { %436 = vrot.lane.b32.xlu1 %v3530_v31, %s3360_s24 }
 0x29e   :  { %v360_v33 = vpop.permute.xlu0 %359 }
 0x29f   :  { %3054 = vmatpush3.xpose.msk.msra.mxu0 %vm313_vm3, %v360_v33 }
 0x2a0   :  { %v437_v34 = vpop.permute.xlu1 %436  ;;  %3082 = vmatprep.subr.mxu0 %v3357_v4 }
 0x2a1   :  { %3059 = vmatpush3.xpose.msk.msra.mxu1 %vm313_vm3, %v437_v34 }
 0x2a2   :  { %3056 = vmatmul.mubr.msk.f32.vlgmr.msra.gmra.mrb[4].mxu0 %vm313_vm3, %v3528_v28  ;;  %3245 = vmatprep.subr.bf16.mxu1 %v3361_v35 }
 0x2a3   :  { %3084 = vmatprep.mubr.msk.f32.mxu0 %vm3359_vm1, %v3357_v4 }
 0x2a4   :  { %3061 = vmatmul.mubr.msk.f32.vlgmr.msra.gmra.mrb[4].mxu1 %vm313_vm3, %v3530_v31 }
 0x2a5   :  { %3079 = vmatprep.mubr.msk.f32.mxu1 %vm3359_vm1, %v3357_v4  ;;  %3247 = vmatpush3.bf16.msra.mxu1 %v3554_v41 }
 0x2a6   :  { %3248 = vmatprep.subr.bf16.mxu1 %v3361_v35 }
 0x2a9   :  { %3250 = vmatpush3.bf16.msra.mxu1 %v3564_v48 }
 0x2aa   :  { %3251 = vmatprep.subr.bf16.mxu1 %v3361_v35 }
 0x2ad   :  { %3253 = vmatpush3.bf16.msra.mxu1 %v3577_v57 }
 0x2ae   :  { %3254 = vmatprep.subr.bf16.mxu1 %v3361_v35 }
 0x2b1   :  { %3256 = vmatpush3.bf16.msra.mxu1 %v3594_v6 }
 0x2b2   :  { %3092 = vmatprep.subr.mxu1 %v3357_v4 }
 0x375   :  { %v431_v51 = vpop.f32.mrb[4].mxu0 }
 0x376   :  { %v512_v52 = vcombine.high %v431_v51, %v3357_v4  ;;  %v3057_v53 = vpop.f32.mrb[5].mxu0  ;;  %v519_v58 = vrot.slane %v431_v51, %v3566_v49 }
 0x377   :  { %v508_v56 = vpop.f32.mrb[4].mxu1 }
 0x378   :  { %v527_v59 = vcombine.high %v508_v56, %v3357_v4  ;;  %v534_v60 = vrot.slane %v508_v56, %v3566_v49  ;;  %v3062_v62 = vpop.f32.mrb[5].mxu1  ;;  %v526_v63 = vrot.slane %v512_v52, %v3566_v49  ;;  %v3629_v52 = vld [vmem:[%s3928_s2] sm:$0xff]  ;;  %s3373_s2 = smov 104  }
 0x379   :  { %3083 = vmatpush3.msra.mxu0 %v3629_v52 }
 0x37a   :  { %v541_v0 = vrot.slane %v527_v59, %v3566_v49  ;;  %v542_v1 = vcombine.low %v519_v58, %v534_v60  ;;  %v543_v2 = vcombine.high %v519_v58, %v534_v60  ;;  %3087 = vmatprep.subr.mxu0 %v3357_v4 }
 0x37c   :  { %v550_v7 = vrot.slane %v542_v1, %v3582_v61  ;;  %v558_v8 = vcombine.low %v526_v63, %v541_v0  ;;  %v559_v9 = vcombine.high %v526_v63, %v541_v0  ;;  %v557_v10 = vrot.slane %v543_v2, %v3582_v61 }
 0x37e   :  { %583 = vrot.lane.b32.xlu0 %v557_v10, %s3364_s25  ;;  %v574_v11 = vcombine.high %v550_v7, %v3357_v4  ;;  %v566_v12 = vrot.slane %v558_v8, %v3582_v61  ;;  %v575_v13 = vcombine.high %v557_v10, %v3357_v4  ;;  %v573_v14 = vrot.slane %v559_v9, %v3582_v61 }
 0x380   :  { %579 = vrot.lane.b32.xlu1 %v574_v11, %s3365_s26  ;;  %v576_v15 = vcombine.high %v566_v12, %v3357_v4  ;;  %v577_v16 = vcombine.high %v573_v14, %v3357_v4 }
 0x382   :  { %591 = vrot.lane.b32.xlu0 %v566_v12, %s3366_s1 }
 0x384   :  { %587 = vrot.lane.b32.xlu1 %v575_v13, %s3367_s27 }
 0x386   :  { %599 = vrot.lane.b32.xlu0 %v573_v14, %s3368_s28 }
 0x388   :  { %595 = vrot.lane.b32.xlu1 %v576_v15, %s3369_s29 }
 0x38c   :  { %603 = vrot.lane.b32.xlu1 %v577_v16, %s3370_s30 }
 0x3f0   :  { %v584_v17 = vpop.permute.xlu0 %583 }
 0x3f2   :  { %v580_v18 = vpop.permute.xlu1 %579 }
 0x3f3   :  { %v607_v19 = vsel %vm606_vm4, %v550_v7, %v580_v18 }
 0x3f4   :  { %v609_v20 = vsel %vm608_vm5, %v607_v19, %v584_v17  ;;  %v592_v24 = vpop.permute.xlu0 %591  ;;  %v3305_v17 = vld [vmem:[%s3934_s8] sm:$0xff]  }
 0x3f6   :  { %v588_v22 = vpop.permute.xlu1 %587 }
 0x3f7   :  { %v611_v25 = vsel %vm610_vm6, %v609_v20, %v588_v22  ;;  %v3306_v20 = vld [vmem:[%s3934_s8 + $0x8] sm:$0xff]  }
 0x3f8   :  { %v612_v26 = vsel %vm313_vm3, %v611_v25, %v592_v24  ;;  %v600_v30 = vpop.permute.xlu0 %599 }
 0x3fa   :  { %v596_v27 = vpop.permute.xlu1 %595 }
 0x3fb   :  { %v614_v29 = vsel %vm613_vm7, %v612_v26, %v596_v27 }
 0x3fc   :  { %v616_v32 = vsel %vm615_vm8, %v614_v29, %v600_v30  ;;  %v2868_v29 = vld [vmem:[%s3935_s9] ss:$0 sm:$0xff] }
 0x3fe   :  { %v604_v33 = vpop.permute.xlu1 %603 }
 0x3ff   :  { %v618_v34 = vsel %vm617_vm9, %v616_v32, %v604_v33 }
 0x400   :  { %3080 = vmatmul.mubr.msk.f32.vlgmr.msra.gmra.mrb[6].mxu1 %vm619_vm10, %v618_v34 }
 0x401   :  { %3094 = vmatprep.mubr.msk.f32.mxu1 %vm3359_vm1, %v3357_v4 }
 0x4d3   :  { %v689_v36 = vpop.f32.mrb[6].mxu1 }
 0x4d4   :  { %v693_v37 = vmul.f32 0.03125, %v689_v36  ;;  %v3081_v38 = vpop.f32.mrb[7].mxu1 }
 0x4d6   :  { %v695_v39 = vsel %vm694_vm11, %v693_v37, -inf }
 0x4d7   :  { %696 = vmax.xlane.f32.xlu0 %v695_v39  ;;  %v3679_v39 = vld [vmem:[%s3929_s3] sm:$0xff]  ;;  %s2842_s3 = sshll.u32 %s3378_s17, 4  ;;  %s2843_s3 = int_to_ptr.vmem [resolvable:$true] %s2842_s3 }
 0x4d8   :  { %s3333_s5 = scalar_lea.vmem %s2843_s3, 32  ;;  %p3338_p1 = scmp.lt.s32.totalorder %s2843_s3, %s2843_s3 }
 0x4d9   :  { %p3334_p0 = scmp.ne.s32.totalorder %s2843_s3, %s3333_s5  ;;  %p3339_p2 = scmp.lt.s32.totalorder %s3333_s5, %s3333_s5 }
 0x4db   :  { %p3340_p3 = por %p3339_p2, %p3338_p1 }
 0x4dd   :  { %p3341_p4 = pnand %p3340_p3, %p3334_p0 }
 0x564   :  { %v697_v40 = vpop.xlane.xlu0 %696 }
 0x565   :  { %vm698_vm12 = vcmp.ge.f32.partialorder %v693_v37, %v697_v40  ;;  %v704_v44 = vsub.f32 %v693_v37, %v697_v40 }
 0x566   :  { %v699_v42 = vsel %vm698_vm12, -inf, %v693_v37 }
 0x567   :  { %v700_v43 = vsel %vm694_vm11, %v699_v42, -inf  ;;  %v705_v45 = vmul.f32 1.442695, %v704_v44 }
 0x568   :  { %701 = vmax.xlane.f32.xlu1 %v700_v43 }
 0x569   :  { %3321 = vpow2.f32 %v705_v45 }
 0x573   :  { %v3322_v47 = vpop.eup %3321 }
 0x5f5   :  { %v702_v46 = vpop.xlane.xlu1 %701 }
 0x5f6   :  { %vm703_vm13 = vcmp.ge.f32.partialorder %v693_v37, %v702_v46 }
 0x5f7   :  { %v707_v50 = vsel %vm703_vm13, %v3322_v47, 0.0 }
 0x5f8   :  { %v708_v51 = vsel %vm694_vm11, %v707_v50, 0.0 }
 0x5f9   :  { %709 = vadd.xlane.f32.xlu0 %v708_v51  ;;  %v3309_v51 = vld [vmem:[%s3937_s11] sm:$0xff]  }
 0x686   :  { %v710_v53 = vpop.xlane.xlu0 %709 }
 0x687   :  { %3323 = vrcp.f32 %v710_v53  ;;  %v3310_v53 = vld [vmem:[%s3937_s11 + $0x8] sm:$0xff]  }
 0x691   :  { %v3324_v54 = vpop.eup %3323 }
 0x692   :  { %v712_v55 = vmul.f32 %v3324_v54, %v707_v50 }
 0x694   :  { %3085 = vmatmul.mubr.msk.f32.vlgmr.msra.gmra.mrb[6].mxu0 %vm606_vm4, %v712_v55 }
 0x695   :  { %3089 = vmatprep.mubr.msk.f32.mxu0 %vm3359_vm1, %v3357_v4 }
 0x767   :  { %v782_v56 = vpop.f32.mrb[6].mxu0 }
 0x768   :  { %790 = vrot.lane.b32.xlu1 %v782_v56, %s3371_s18  ;;  %787 = vrot.lane.b32.xlu0 %v782_v56, %s3372_s19  ;;  %v3086_v58 = vpop.f32.mrb[7].mxu0 }
 0x76c   :  { %793 = vrot.lane.b32.xlu1 %v782_v56, %s3373_s2  ;;  %796 = vrot.lane.b32.xlu0 %v782_v56, %s3360_s24 }
 0x770   :  { %799 = vrot.lane.b32.xlu1 %v782_v56, %s3374_s20  ;;  %802 = vrot.lane.b32.xlu0 %v782_v56, %s3375_s21 }
 0x774   :  { %805 = vrot.lane.b32.xlu1 %v782_v56, %s3376_s4  ;;  %858 = vrot.lane.b32.xlu0 %v3528_v28, %s3377_s22 }
 0x778   :  { %934 = vrot.lane.b32.xlu1 %v3530_v31, %s3377_s22 }
 0x7da   :  { %v791_v59 = vpop.permute.xlu1 %790  ;;  %v788_v60 = vpop.permute.xlu0 %787 }
 0x7db   :  { %v808_v3 = vcombine.low %v782_v56, %v791_v59 }
 0x7dd   :  { %v815_v10 = vrot.slane %v808_v3, %v3566_v49 }
 0x7de   :  { %v794_v62 = vpop.permute.xlu1 %793  ;;  %v797_v63 = vpop.permute.xlu0 %796 }
 0x7df   :  { %v816_v0 = vcombine.low %v788_v60, %v794_v62 }
 0x7e1   :  { %v823_v5 = vrot.slane %v816_v0, %v3566_v49 }
 0x7e2   :  { %v800_v1 = vpop.permute.xlu1 %799  ;;  %v803_v2 = vpop.permute.xlu0 %802 }
 0x7e3   :  { %v824_v7 = vcombine.low %v797_v63, %v803_v2  ;;  %v840_v28 = vcombine.low %v815_v10, %v823_v5 }
 0x7e5   :  { %v831_v31 = vrot.slane %v824_v7, %v3566_v49  ;;  %v847_v15 = vrot.slane %v840_v28, %v3582_v61  ;;  %v3311_v7 = vld [vmem:[%s3932_s6 + $0x10] sm:$0xff]  }
 0x7e6   :  { %v806_v8 = vpop.permute.xlu1 %805  ;;  %v859_v9 = vpop.permute.xlu0 %858 }
 0x7e7   :  { %v832_v11 = vcombine.low %v800_v1, %v806_v8  ;;  %3088 = vmatpush3.msra.mxu0 %v859_v9  ;;  %v3312_v8 = vld [vmem:[%s3932_s6 + $0x18] sm:$0xff]  }
 0x7e8   :  { %3097 = vmatprep.subr.bf16.mxu0 %v3357_v4 }
 0x7e9   :  { %v839_v12 = vrot.slane %v832_v11, %v3566_v49 }
 0x7ea   :  { %v935_v13 = vpop.permute.xlu1 %934 }
 0x7eb   :  { %v848_v14 = vcombine.low %v831_v31, %v839_v12  ;;  %3093 = vmatpush3.msra.mxu1 %v935_v13 }
 0x7ec   :  { %3105 = vmatprep.subr.mxu1 %v3357_v4 }
 0x7ed   :  { %v855_v16 = vrot.slane %v848_v14, %v3582_v61 }
 0x7ef   :  { %v856_v18 = vcombine.low %v847_v15, %v855_v16  ;;  %v857_v19 = vcombine.high %v847_v15, %v855_v16 }
 0x7f1   :  { %3090 = vmatmul.mubr.msk.f32.vlgmr.msra.gmra.mrb[8].mxu0 %vm606_vm4, %v856_v18  ;;  %3095 = vmatmul.mubr.msk.f32.vlgmr.msra.gmra.mrb[8].mxu1 %vm606_vm4, %v857_v19 }
 0x7f2   :  { %3098 = vmatpush3.bf16.msra.mxu0 %v3305_v17  ;;  %3101 = vmatprep.mubr.msk.bf16.mxu0 %vm3359_vm1, %v3357_v4 }
 0x7f3   :  { %3099 = vmatprep.subr.bf16.mxu0 %v3357_v4  ;;  %3107 = vmatprep.mubr.msk.f32.mxu1 %vm3359_vm1, %v3357_v4 }
 0x7f6   :  { %3100 = vmatpush3.bf16.msra.mxu0 %v3306_v20 }
 0x7f7   :  { %3115 = vmatprep.subr.bf16.mxu0 %v3357_v4 }
 0x8c4   :  { %v930_v22 = vpop.f32.mrb[8].mxu0  ;;  %v1006_v24 = vpop.f32.mrb[8].mxu1 }
 0x8c5   :  { %v1010_v25 = vpack.c.bf16 %v1006_v24, %v930_v22  ;;  %v3091_v26 = vpop.f32.mrb[9].mxu0  ;;  %v3096_v27 = vpop.f32.mrb[9].mxu1 }
 0x8c7   :  { %3102 = vmatmul.mubr.msk.bf16.vlgmr.msra.gmra.mrb[12].mxu0 %vm313_vm3, %v1010_v25 }
 0x8c8   :  { %3119 = vmatprep.mubr.msk.bf16.mxu0 %vm3359_vm1, %v3357_v4 }
 0x99a   :  { %v1071_v30 = vpop.f32.mrb[12].mxu0 }
 0x99b   :  { %v1072_v32 = vadd.f32 %v2868_v29, %v1071_v30  ;;  %v3103_v33 = vpop.f32.mrb[13].mxu0 }
 0x99c   :  { %v1074_v34 = vpop.f32.mrb[14].mxu0 }
 0x99d   :  { %v1078_v36 = vadd.f32 %v1072_v32, %v3516_v21  ;;  %v1075_v37 = vadd.f32 %v2868_v29, %v1074_v34  ;;  %v3104_v38 = vpop.f32.mrb[15].mxu0  ;;  %v3307_v21 = vld [vmem:[%s3936_s10] sm:$0xff]  }
 0x99e   :  { %3116 = vmatpush3.bf16.msra.mxu0 %v3307_v21 }
 0x99f   :  { %v1079_v40 = vadd.f32 %v1075_v37, %v3518_v23  ;;  %3106 = vmatpush3.msra.mxu1 %v1078_v36  ;;  %3117 = vmatprep.subr.bf16.mxu0 %v3357_v4  ;;  %v3308_v23 = vld [vmem:[%s3936_s10 + $0x8] sm:$0xff]  }
 0x9a0   :  { %3108 = vmatmul.mubr.msk.f32.vlgmr.msra.gmra.mrb[10].mxu1 %vm606_vm4, %v3679_v39  ;;  %3110 = vmatprep.subr.mxu1 %v3357_v4 }
 0x9a1   :  { %3111 = vmatpush3.msra.mxu1 %v1079_v40  ;;  %3112 = vmatprep.mubr.msk.f32.mxu1 %vm3359_vm1, %v3357_v4 }
 0x9a2   :  { %3123 = vmatprep.subr.bf16.mxu1 %v3357_v4  ;;  %3118 = vmatpush3.bf16.msra.mxu0 %v3308_v23 }
 0x9a3   :  { %3131 = vmatprep.subr.mxu0 %v3357_v4 }
 0x9a4   :  { %3113 = vmatmul.mubr.msk.f32.vlgmr.msra.gmra.mrb[12].mxu1 %vm606_vm4, %v3679_v39 }
 0x9a5   :  { %3127 = vmatprep.mubr.msk.bf16.mxu1 %vm3359_vm1, %v3357_v4  ;;  %3124 = vmatpush3.bf16.msra.mxu1 %v3309_v51 }
 0x9a6   :  { %3125 = vmatprep.subr.bf16.mxu1 %v3357_v4 }
 0x9a9   :  { %3126 = vmatpush3.bf16.msra.mxu1 %v3310_v53 }
 0x9aa   :  { %3136 = vmatprep.subr.mxu1 %v3357_v4 }
 0xa73   :  { %v1149_v42 = vpop.f32.mrb[10].mxu1 }
 0xa74   :  { %v3109_v43 = vpop.f32.mrb[11].mxu1  ;;  %v1223_v45 = vsub.f32 %v1078_v36, %v1149_v42 }
 0xa77   :  { %v1219_v44 = vpop.f32.mrb[12].mxu1 }
 0xa78   :  { %v1224_v46 = vsub.f32 %v1079_v40, %v1219_v44  ;;  %v3114_v47 = vpop.f32.mrb[13].mxu1 }
 0xa7a   :  { %v1225_v50 = vpack.c.bf16 %v1224_v46, %v1223_v45 }
 0xa7c   :  { %3120 = vmatmul.mubr.msk.bf16.vlgmr.msra.gmra.mrb[16].mxu0 %vm313_vm3, %v1225_v50 }
 0xa7d   :  { %3133 = vmatprep.mubr.msk.f32.mxu0 %vm3359_vm1, %v3357_v4 }
 0xb4f   :  { %v1279_v54 = vpop.f32.mrb[16].mxu0 }
 0xb50   :  { %v3121_v55 = vpop.f32.mrb[17].mxu0  ;;  %v1286_v58 = vmax.f32 %v1279_v54, 0.0 }
 0xb51   :  { %v1282_v56 = vpop.f32.mrb[18].mxu0 }
 0xb52   :  { %v1287_v59 = vmax.f32 %v1282_v56, 0.0  ;;  %v3122_v60 = vpop.f32.mrb[19].mxu0 }
 0xb54   :  { %v1288_v62 = vpack.c.bf16 %v1287_v59, %v1286_v58 }
 0xb56   :  { %3128 = vmatmul.mubr.msk.bf16.vlgmr.msra.gmra.mrb[16].mxu1 %vm313_vm3, %v1288_v62 }
 0xb57   :  { %3138 = vmatprep.mubr.msk.f32.mxu1 %vm3359_vm1, %v3357_v4 }
 0xc29   :  { %v1342_v63 = vpop.f32.mrb[16].mxu1 }
 0xc2a   :  { %v1349_v0 = vadd.f32 %v1342_v63, %v1223_v45  ;;  %v3129_v1 = vpop.f32.mrb[17].mxu1 }
 0xc2b   :  { %v1345_v2 = vpop.f32.mrb[18].mxu1 }
 0xc2c   :  { %v1350_v3 = vadd.f32 %v1345_v2, %v1224_v46  ;;  %v3130_v5 = vpop.f32.mrb[19].mxu1  ;;  %3132 = vmatpush3.msra.mxu0 %v1349_v0 }
 0xc2d   :  { %3134 = vmatmul.mubr.msk.f32.vlgmr.msra.gmra.mrb[10].mxu0 %vm606_vm4, %v3679_v39  ;;  %3141 = vmatprep.subr.bf16.mxu0 %v3357_v4 }
 0xc2e   :  { %3137 = vmatpush3.msra.mxu1 %v1350_v3  ;;  %3145 = vmatprep.mubr.msk.bf16.mxu0 %vm3359_vm1, %v3357_v4 }
 0xc2f   :  { %3139 = vmatmul.mubr.msk.f32.vlgmr.msra.gmra.mrb[14].mxu1 %vm606_vm4, %v3679_v39  ;;  %3149 = vmatprep.subr.mxu1 %v3357_v4 }
 0xc30   :  { %3151 = vmatprep.mubr.msk.f32.mxu1 %vm3359_vm1, %v3357_v4  ;;  %3142 = vmatpush3.bf16.msra.mxu0 %v3311_v7 }
 0xc31   :  { %3143 = vmatprep.subr.bf16.mxu0 %v3357_v4 }
 0xc34   :  { %3144 = vmatpush3.bf16.msra.mxu0 %v3312_v8 }
 0xc35   :  { %3257 = vmatprep.subr.bf16.mxu0 %v3361_v35 }
 0xd00   :  { %v1417_v9 = vpop.f32.mrb[10].mxu0 }
 0xd01   :  { %v3135_v10 = vpop.f32.mrb[11].mxu0  ;;  %v3732_v28 = vsub.f32 %v1349_v0, %v1417_v9 }
 0xd02   :  { %v1487_v11 = vpop.f32.mrb[14].mxu1 }
 0xd03   :  { %v3734_v31 = vsub.f32 %v1350_v3, %v1487_v11  ;;  %v3140_v12 = vpop.f32.mrb[15].mxu1 }
 0xd05   :  { %v1493_v13 = vpack.c.bf16 %v3734_v31, %v3732_v28 }
 0xd07   :  { %3146 = vmatmul.mubr.msk.bf16.vlgmr.msra.gmra.mrb[20].mxu0 %vm313_vm3, %v1493_v13 }
 0xd08   :  { %3259 = vmatpush3.bf16.msra.mxu0 %v3554_v41  ;;  %3175 = vmatprep.mubr.msk.f32.mxu0 %vm3359_vm1, %v3357_v4  ;;  %v2887_v41 = vld [vmem:[%s3933_s7 + $0x1] ss:$0 sm:$0xff] }
 0xd09   :  { %3260 = vmatprep.subr.bf16.mxu0 %v3361_v35 }
 0xd0c   :  { %3262 = vmatpush3.bf16.msra.mxu0 %v3564_v48 }
 0xd0d   :  { %3263 = vmatprep.subr.bf16.mxu0 %v3361_v35 }
 0xd10   :  { %3265 = vmatpush3.bf16.msra.mxu0 %v3577_v57 }
 0xd11   :  { %3266 = vmatprep.subr.bf16.mxu0 %v3361_v35 }
 0xd14   :  { %3268 = vmatpush3.bf16.msra.mxu0 %v3594_v6 }
 0xd15   :  { %3201 = vmatprep.subr.mxu0 %v3357_v4 }
 0xdda   :  { %v1556_v14 = vpop.f32.mrb[20].mxu0 }
 0xddb   :  { %v3752_v15 = vadd.f32 %v2887_v41, %v1556_v14  ;;  %v3147_v16 = vpop.f32.mrb[21].mxu0 }
 0xddc   :  { %v1559_v17 = vpop.f32.mrb[22].mxu0 }
 0xddd   :  { %v3754_v48 = vadd.f32 %v2887_v41, %v1559_v17  ;;  %1564 = vrot.lane.b32.xlu0 %v3752_v15, %s3360_s24  ;;  %v3148_v57 = vpop.f32.mrb[23].mxu0 }
 0xddf   :  { %1641 = vrot.lane.b32.xlu1 %v3754_v48, %s3360_s24 }
 0xe4f   :  { %v1565_v35 = vpop.permute.xlu0 %1564 }
 0xe50   :  { %3150 = vmatpush3.xpose.msk.msra.mxu1 %vm313_vm3, %v1565_v35 }
 0xe51   :  { %3154 = vmatprep.subr.mxu1 %v3357_v4  ;;  %v1642_v6 = vpop.permute.xlu1 %1641 }
 0xe53   :  { %3152 = vmatmul.mubr.msk.f32.vlgmr.msra.gmra.mrb[20].mxu1 %vm313_vm3, %v3752_v15 }
 0xe54   :  { %3155 = vmatpush3.xpose.msk.msra.mxu1 %vm313_vm3, %v1642_v6  ;;  %3156 = vmatprep.mubr.msk.f32.mxu1 %vm3359_vm1, %v3357_v4 }
 0xe55   :  { %3178 = vmatprep.subr.mxu1 %v3357_v4 }
 0xe57   :  { %3157 = vmatmul.mubr.msk.f32.vlgmr.msra.gmra.mrb[22].mxu1 %vm313_vm3, %v3754_v48 }
 0xe58   :  { %3179 = vmatpush3.msra.mxu1 %v3629_v52  ;;  %3180 = vmatprep.mubr.msk.f32.mxu1 %vm3359_vm1, %v3357_v4 }
 0xe59   :  { %3183 = vmatprep.subr.mxu1 %v3357_v4 }
 0xf26   :  { %v1636_v18 = vpop.f32.mrb[20].mxu1 }
 0xf27   :  { %v3153_v19 = vpop.f32.mrb[21].mxu1  ;;  %v1717_v20 = vcombine.high %v1636_v18, %v3357_v4  ;;  %v1724_v24 = vrot.slane %v1636_v18, %v3566_v49 }
 0xf29   :  { %v1731_v29 = vrot.slane %v1717_v20, %v3566_v49 }
 0xf2a   :  { %v1713_v22 = vpop.f32.mrb[22].mxu1 }
 0xf2b   :  { %v1732_v25 = vcombine.high %v1713_v22, %v3357_v4  ;;  %v1739_v26 = vrot.slane %v1713_v22, %v3566_v49  ;;  %v3158_v27 = vpop.f32.mrb[23].mxu1 }
 0xf2d   :  { %v1746_v52 = vrot.slane %v1732_v25, %v3566_v49  ;;  %v1747_v30 = vcombine.low %v1724_v24, %v1739_v26  ;;  %v1748_v32 = vcombine.high %v1724_v24, %v1739_v26 }
 0xf2f   :  { %v1755_v33 = vrot.slane %v1747_v30, %v3582_v61  ;;  %v1763_v34 = vcombine.low %v1731_v29, %v1746_v52  ;;  %v1764_v36 = vcombine.high %v1731_v29, %v1746_v52  ;;  %v1762_v37 = vrot.slane %v1748_v32, %v3582_v61 }
 0xf31   :  { %1788 = vrot.lane.b32.xlu1 %v1762_v37, %s3364_s25  ;;  %v1779_v38 = vcombine.high %v1755_v33, %v3357_v4  ;;  %v1771_v40 = vrot.slane %v1763_v34, %v3582_v61  ;;  %v1780_v21 = vcombine.high %v1762_v37, %v3357_v4  ;;  %v1778_v23 = vrot.slane %v1764_v36, %v3582_v61 }
 0xf33   :  { %1784 = vrot.lane.b32.xlu0 %v1779_v38, %s3365_s26  ;;  %v1781_v42 = vcombine.high %v1771_v40, %v3357_v4  ;;  %v1782_v43 = vcombine.high %v1778_v23, %v3357_v4 }
 0xf35   :  { %1796 = vrot.lane.b32.xlu1 %v1771_v40, %s3366_s1 }
 0xf37   :  { %1792 = vrot.lane.b32.xlu0 %v1780_v21, %s3367_s27 }
 0xf39   :  { %1804 = vrot.lane.b32.xlu1 %v1778_v23, %s3368_s28 }
 0xf3b   :  { %1800 = vrot.lane.b32.xlu0 %v1781_v42, %s3369_s29 }
 0xf3f   :  { %1808 = vrot.lane.b32.xlu0 %v1782_v43, %s3370_s30 }
 0xfa3   :  { %v1789_v44 = vpop.permute.xlu1 %1788 }
 0xfa5   :  { %v1785_v45 = vpop.permute.xlu0 %1784 }
 0xfa6   :  { %v1811_v46 = vsel %vm606_vm4, %v1755_v33, %v1785_v45 }
 0xfa7   :  { %v1812_v47 = vsel %vm608_vm5, %v1811_v46, %v1789_v44  ;;  %v1797_v51 = vpop.permute.xlu1 %1796  ;;  %v2904_v46 = vld [vmem:[%s3935_s9 + $0x1] ss:$0 sm:$0xff] }
 0xfa9   :  { %v1793_v50 = vpop.permute.xlu0 %1792 }
 0xfaa   :  { %v1813_v53 = vsel %vm610_vm6, %v1812_v47, %v1793_v50 }
 0xfab   :  { %v1814_v54 = vsel %vm313_vm3, %v1813_v53, %v1797_v51  ;;  %v1805_v58 = vpop.permute.xlu1 %1804 }
 0xfad   :  { %v1801_v55 = vpop.permute.xlu0 %1800 }
 0xfae   :  { %v1815_v56 = vsel %vm613_vm7, %v1814_v54, %v1801_v55 }
 0xfaf   :  { %v1816_v59 = vsel %vm615_vm8, %v1815_v56, %v1805_v58 }
 0xfb1   :  { %v1809_v60 = vpop.permute.xlu0 %1808 }
 0xfb2   :  { %v1817_v62 = vsel %vm617_vm9, %v1816_v59, %v1809_v60 }
 0xfb3   :  { %3176 = vmatmul.mubr.msk.f32.vlgmr.msra.gmra.mrb[24].mxu0 %vm619_vm10, %v1817_v62 }
 0xfb4   :  { %3203 = vmatprep.mubr.msk.f32.mxu0 %vm3359_vm1, %v3357_v4 }
0x1086   :  { %v1887_v63 = vpop.f32.mrb[24].mxu0 }
0x1087   :  { %v1891_v0 = vmul.f32 0.03125, %v1887_v63  ;;  %v3177_v1 = vpop.f32.mrb[25].mxu0 }
0x1089   :  { %v1892_v2 = vsel %vm694_vm11, %v1891_v0, -inf }
0x108a   :  { %1893 = vmax.xlane.f32.xlu1 %v1892_v2 }
0x1117   :  { %v1894_v3 = vpop.xlane.xlu1 %1893 }
0x1118   :  { %vm1895_vm14 = vcmp.ge.f32.partialorder %v1891_v0, %v1894_v3  ;;  %v1901_v8 = vsub.f32 %v1891_v0, %v1894_v3  ;;  %v3317_v3 = vld [vmem:[%s3937_s11 + $0x10] sm:$0xff]  }
0x1119   :  { %v1896_v5 = vsel %vm1895_vm14, -inf, %v1891_v0 }
0x111a   :  { %v1897_v7 = vsel %vm694_vm11, %v1896_v5, -inf  ;;  %v1902_v9 = vmul.f32 1.442695, %v1901_v8  ;;  %v3318_v5 = vld [vmem:[%s3937_s11 + $0x18] sm:$0xff]  }
0x111b   :  { %1898 = vmax.xlane.f32.xlu0 %v1897_v7 }
0x111c   :  { %3325 = vpow2.f32 %v1902_v9 }
0x1126   :  { %v3326_v11 = vpop.eup %3325 }
0x11a8   :  { %v1899_v10 = vpop.xlane.xlu0 %1898 }
0x11a9   :  { %vm1900_vm15 = vcmp.ge.f32.partialorder %v1891_v0, %v1899_v10 }
0x11aa   :  { %v1904_v12 = vsel %vm1900_vm15, %v3326_v11, 0.0 }
0x11ab   :  { %v1905_v13 = vsel %vm694_vm11, %v1904_v12, 0.0 }
0x11ac   :  { %1906 = vadd.xlane.f32.xlu0 %v1905_v13 }
0x1239   :  { %v1907_v41 = vpop.xlane.xlu0 %1906 }
0x123a   :  { %3327 = vrcp.f32 %v1907_v41 }
0x1244   :  { %v3328_v14 = vpop.eup %3327 }
0x1245   :  { %v1909_v16 = vmul.f32 %v3328_v14, %v1904_v12 }
0x1247   :  { %3181 = vmatmul.mubr.msk.f32.vlgmr.msra.gmra.mrb[24].mxu1 %vm606_vm4, %v1909_v16 }
0x1248   :  { %3185 = vmatprep.mubr.msk.f32.mxu1 %vm3359_vm1, %v3357_v4 }
0x131a   :  { %v1979_v17 = vpop.f32.mrb[24].mxu1 }
0x131b   :  { %1987 = vrot.lane.b32.xlu0 %v1979_v17, %s3371_s18  ;;  %1984 = vrot.lane.b32.xlu1 %v1979_v17, %s3372_s19  ;;  %v3182_v57 = vpop.f32.mrb[25].mxu1 }
0x131f   :  { %1996 = vrot.lane.b32.xlu0 %v1979_v17, %s3374_s20  ;;  %1990 = vrot.lane.b32.xlu1 %v1979_v17, %s3373_s2 }
0x1323   :  { %2002 = vrot.lane.b32.xlu0 %v1979_v17, %s3376_s4  ;;  %1993 = vrot.lane.b32.xlu1 %v1979_v17, %s3360_s24 }
0x1327   :  { %2131 = vrot.lane.b32.xlu0 %v3754_v48, %s3377_s22  ;;  %1999 = vrot.lane.b32.xlu1 %v1979_v17, %s3375_s21 }
0x132b   :  { %2055 = vrot.lane.b32.xlu1 %v3752_v15, %s3377_s22 }
0x138d   :  { %v1988_v35 = vpop.permute.xlu0 %1987  ;;  %v1985_v6 = vpop.permute.xlu1 %1984 }
0x138e   :  { %v2005_v25 = vcombine.low %v1979_v17, %v1988_v35 }
0x1390   :  { %v2012_v52 = vrot.slane %v2005_v25, %v3566_v49 }
0x1391   :  { %v1997_v18 = vpop.permute.xlu0 %1996  ;;  %v1991_v19 = vpop.permute.xlu1 %1990 }
0x1392   :  { %v2013_v20 = vcombine.low %v1985_v6, %v1991_v19 }
0x1394   :  { %v2020_v26 = vrot.slane %v2013_v20, %v3566_v49 }
0x1395   :  { %v2003_v22 = vpop.permute.xlu0 %2002  ;;  %v1994_v24 = vpop.permute.xlu1 %1993 }
0x1396   :  { %v2029_v27 = vcombine.low %v1997_v18, %v2003_v22  ;;  %v2037_v30 = vcombine.low %v2012_v52, %v2020_v26 }
0x1398   :  { %v2036_v32 = vrot.slane %v2029_v27, %v3566_v49  ;;  %v2044_v36 = vrot.slane %v2037_v30, %v3582_v61 }
0x1399   :  { %v2000_v29 = vpop.permute.xlu1 %1999  ;;  %v2132_v40 = vpop.permute.xlu0 %2131 }
0x139a   :  { %v2021_v48 = vcombine.low %v1994_v24, %v2000_v29 }
0x139c   :  { %v2028_v15 = vrot.slane %v2021_v48, %v3566_v49  ;;  %v3313_v49 = vld [vmem:[%s3934_s8 + $0x10] sm:$0xff]  }
0x139d   :  { %v2056_v33 = vpop.permute.xlu1 %2055 }
0x139e   :  { %v2045_v34 = vcombine.low %v2028_v15, %v2036_v32  ;;  %3184 = vmatpush3.msra.mxu1 %v2056_v33 }
0x139f   :  { %3188 = vmatprep.subr.mxu1 %v3357_v4 }
0x13a0   :  { %v2052_v37 = vrot.slane %v2045_v34, %v3582_v61  ;;  %v3314_v61 = vld [vmem:[%s3934_s8 + $0x18] sm:$0xff]  }
0x13a2   :  { %v2053_v38 = vcombine.low %v2044_v36, %v2052_v37  ;;  %v2054_v21 = vcombine.high %v2044_v36, %v2052_v37  ;;  %v3319_v36 = vld [vmem:[%s3940_s14] sm:$0xff]   ;;  %v3320_v37 = vld [vmem:[%s3940_s14 + $0x8] sm:$0xff]  }
0x13a4   :  { %3186 = vmatmul.mubr.msk.f32.vlgmr.msra.gmra.mrb[26].mxu1 %vm606_vm4, %v2053_v38 }
0x13a5   :  { %3189 = vmatpush3.msra.mxu1 %v2132_v40  ;;  %3190 = vmatprep.mubr.msk.f32.mxu1 %vm3359_vm1, %v3357_v4 }
0x13a6   :  { %3193 = vmatprep.subr.bf16.mxu1 %v3357_v4 }
0x13a8   :  { %3191 = vmatmul.mubr.msk.f32.vlgmr.msra.gmra.mrb[28].mxu1 %vm606_vm4, %v2054_v21 }
0x13a9   :  { %3197 = vmatprep.mubr.msk.bf16.mxu1 %vm3359_vm1, %v3357_v4  ;;  %3194 = vmatpush3.bf16.msra.mxu1 %v3313_v49 }
0x13aa   :  { %3195 = vmatprep.subr.bf16.mxu1 %v3357_v4 }
0x13ad   :  { %3196 = vmatpush3.bf16.msra.mxu1 %v3314_v61 }
0x13ae   :  { %3211 = vmatprep.subr.bf16.mxu1 %v3357_v4 }
0x1477   :  { %v2127_v23 = vpop.f32.mrb[26].mxu1 }
0x1478   :  { %v3187_v42 = vpop.f32.mrb[27].mxu1 }
0x147b   :  { %v2203_v43 = vpop.f32.mrb[28].mxu1 }
0x147c   :  { %v2207_v44 = vpack.c.bf16 %v2203_v43, %v2127_v23  ;;  %v3192_v45 = vpop.f32.mrb[29].mxu1  ;;  %v2926_v43 = vld [vmem:[%s3938_s12] ss:$0 sm:$0xff] }
0x147e   :  { %3198 = vmatmul.mubr.msk.bf16.vlgmr.msra.gmra.mrb[32].mxu1 %vm313_vm3, %v2207_v44 }
0x147f   :  { %3215 = vmatprep.mubr.msk.bf16.mxu1 %vm3359_vm1, %v3357_v4 }
0x1551   :  { %v2270_v47 = vpop.f32.mrb[32].mxu1 }
0x1552   :  { %v2271_v50 = vadd.f32 %v2904_v46, %v2270_v47  ;;  %v3199_v51 = vpop.f32.mrb[33].mxu1 }
0x1553   :  { %v2273_v53 = vpop.f32.mrb[34].mxu1 }
0x1554   :  { %v2277_v54 = vadd.f32 %v2271_v50, %v3732_v28  ;;  %v2274_v55 = vadd.f32 %v2904_v46, %v2273_v53  ;;  %v3200_v56 = vpop.f32.mrb[35].mxu1  ;;  %v3315_v28 = vld [vmem:[%s3936_s10 + $0x10] sm:$0xff]  }
0x1555   :  { %3212 = vmatpush3.bf16.msra.mxu1 %v3315_v28 }
0x1556   :  { %v2278_v58 = vadd.f32 %v2274_v55, %v3734_v31  ;;  %3202 = vmatpush3.msra.mxu0 %v2277_v54  ;;  %3213 = vmatprep.subr.bf16.mxu1 %v3357_v4  ;;  %v3316_v31 = vld [vmem:[%s3936_s10 + $0x18] sm:$0xff]  }
0x1557   :  { %3204 = vmatmul.mubr.msk.f32.vlgmr.msra.gmra.mrb[26].mxu0 %vm606_vm4, %v3679_v39  ;;  %3206 = vmatprep.subr.mxu0 %v3357_v4 }
0x1558   :  { %3207 = vmatpush3.msra.mxu0 %v2278_v58  ;;  %3208 = vmatprep.mubr.msk.f32.mxu0 %vm3359_vm1, %v3357_v4 }
0x1559   :  { %3219 = vmatprep.subr.bf16.mxu0 %v3357_v4  ;;  %3214 = vmatpush3.bf16.msra.mxu1 %v3316_v31 }
0x155a   :  { %3227 = vmatprep.subr.mxu1 %v3357_v4 }
0x155b   :  { %3209 = vmatmul.mubr.msk.f32.vlgmr.msra.gmra.mrb[28].mxu0 %vm606_vm4, %v3679_v39 }
0x155c   :  { %3223 = vmatprep.mubr.msk.bf16.mxu0 %vm3359_vm1, %v3357_v4  ;;  %3220 = vmatpush3.bf16.msra.mxu0 %v3317_v3 }
0x155d   :  { %3221 = vmatprep.subr.bf16.mxu0 %v3357_v4 }
0x1560   :  { %3222 = vmatpush3.bf16.msra.mxu0 %v3318_v5 }
0x1561   :  { %3232 = vmatprep.subr.mxu0 %v3357_v4 }
0x162a   :  { %v2345_v59 = vpop.f32.mrb[26].mxu0 }
0x162b   :  { %v3205_v60 = vpop.f32.mrb[27].mxu0  ;;  %v2419_v63 = vsub.f32 %v2277_v54, %v2345_v59 }
0x162e   :  { %v2415_v62 = vpop.f32.mrb[28].mxu0 }
0x162f   :  { %v2420_v0 = vsub.f32 %v2278_v58, %v2415_v62  ;;  %v3210_v1 = vpop.f32.mrb[29].mxu0 }
0x1631   :  { %v2421_v2 = vpack.c.bf16 %v2420_v0, %v2419_v63 }
0x1633   :  { %3216 = vmatmul.mubr.msk.bf16.vlgmr.msra.gmra.mrb[36].mxu1 %vm313_vm3, %v2421_v2 }
0x1634   :  { %3229 = vmatprep.mubr.msk.f32.mxu1 %vm3359_vm1, %v3357_v4 }
0x1706   :  { %v2476_v7 = vpop.f32.mrb[36].mxu1 }
0x1707   :  { %v3217_v8 = vpop.f32.mrb[37].mxu1  ;;  %v2483_v10 = vmax.f32 %v2476_v7, 0.0 }
0x1708   :  { %v2479_v9 = vpop.f32.mrb[38].mxu1 }
0x1709   :  { %v2484_v11 = vmax.f32 %v2479_v9, 0.0  ;;  %v3218_v12 = vpop.f32.mrb[39].mxu1 }
0x170b   :  { %v2485_v13 = vpack.c.bf16 %v2484_v11, %v2483_v10 }
0x170d   :  { %3224 = vmatmul.mubr.msk.bf16.vlgmr.msra.gmra.mrb[32].mxu0 %vm313_vm3, %v2485_v13 }
0x170e   :  { %3234 = vmatprep.mubr.msk.f32.mxu0 %vm3359_vm1, %v3357_v4 }
0x17e0   :  { %v2540_v41 = vpop.f32.mrb[32].mxu0 }
0x17e1   :  { %v2547_v14 = vadd.f32 %v2540_v41, %v2419_v63  ;;  %v3225_v16 = vpop.f32.mrb[33].mxu0 }
0x17e2   :  { %v2543_v17 = vpop.f32.mrb[34].mxu0 }
0x17e3   :  { %v2548_v57 = vadd.f32 %v2543_v17, %v2420_v0  ;;  %v3226_v35 = vpop.f32.mrb[35].mxu0  ;;  %3228 = vmatpush3.msra.mxu1 %v2547_v14 }
0x17e4   :  { %3230 = vmatmul.mubr.msk.f32.vlgmr.msra.gmra.mrb[30].mxu1 %vm606_vm4, %v3679_v39  ;;  %3237 = vmatprep.subr.bf16.mxu1 %v3357_v4 }
0x17e5   :  { %3233 = vmatpush3.msra.mxu0 %v2548_v57  ;;  %3241 = vmatprep.mubr.msk.bf16.mxu1 %vm3359_vm1, %v3357_v4  ;;  %vm2834_vm1 = vcmask 17408  }
0x17e6   :  { %3235 = vmatmul.mubr.msk.f32.vlgmr.msra.gmra.mrb[30].mxu0 %vm606_vm4, %v3679_v39  ;;  %3238 = vmatpush3.bf16.msra.mxu1 %v3319_v36 }
0x17e7   :  { %3239 = vmatprep.subr.bf16.mxu1 %v3357_v4  ;;  %v2927_v4 = vld [vmem:[%s3939_s13] ss:$0 sm:$0xff] }
0x17ea   :  { %3240 = vmatpush3.bf16.msra.mxu1 %v3320_v37 }
0x18b7   :  { %v2615_v6 = vpop.f32.mrb[30].mxu1 }
0x18b8   :  { %v2689_v18 = vsub.f32 %v2547_v14, %v2615_v6  ;;  %v3231_v19 = vpop.f32.mrb[31].mxu1  ;;  %v2928_v6 = vld [vmem:[%s3941_s15] ss:$0 sm:$0xff] }
0x18b9   :  { %v2685_v20 = vpop.f32.mrb[30].mxu0 }
0x18ba   :  { %v2690_v22 = vsub.f32 %v2548_v57, %v2685_v20  ;;  %v2691_v24 = vsel %vm313_vm3, %v2689_v18, 0.0  ;;  %v3236_v25 = vpop.f32.mrb[31].mxu0 }
0x18bb   :  { %2692 = vadd.xlane.f32.xlu1 %v2691_v24 }
0x18bc   :  { %v2694_v26 = vsel %vm313_vm3, %v2690_v22, 0.0 }
0x18bd   :  { %2695 = vadd.xlane.f32.xlu0 %v2694_v26 }
0x1948   :  { %v2693_v27 = vpop.xlane.xlu1 %2692 }
0x1949   :  { %v2698_v29 = vmul.f32 0.03125, %v2693_v27 }
0x194a   :  { %v2696_v52 = vpop.xlane.xlu0 %2695 }
0x194b   :  { %v2700_v48 = vsub.f32 %v2689_v18, %v2698_v29  ;;  %v2699_v30 = vmul.f32 0.03125, %v2696_v52 }
0x194d   :  { %v2701_v32 = vsub.f32 %v2690_v22, %v2699_v30  ;;  %v2702_v15 = vmul.f32 %v2700_v48, %v2700_v48 }
0x194f   :  { %v2704_v39 = vsel %vm313_vm3, %v2702_v15, 0.0  ;;  %v2703_v33 = vmul.f32 %v2701_v32, %v2701_v32 }
0x1950   :  { %2705 = vadd.xlane.f32.xlu0 %v2704_v39 }
0x1951   :  { %v2707_v34 = vsel %vm313_vm3, %v2703_v33, 0.0 }
0x1952   :  { %2708 = vadd.xlane.f32.xlu1 %v2707_v34 }
0x19dd   :  { %v2706_v38 = vpop.xlane.xlu0 %2705 }
0x19de   :  { %v2710_v40 = vmul.f32 0.03125, %v2706_v38 }
0x19df   :  { %v2709_v21 = vpop.xlane.xlu1 %2708 }
0x19e0   :  { %v2712_v49 = vadd.f32 1e-05, %v2710_v40  ;;  %v2711_v61 = vmul.f32 0.03125, %v2709_v21 }
0x19e2   :  { %3329 = vrsqrt.f32 %v2712_v49  ;;  %v2713_v23 = vadd.f32 1e-05, %v2711_v61 }
0x19e4   :  { %3331 = vrsqrt.f32 %v2713_v23 }
0x19ec   :  { %v3330_v42 = vpop.eup %3329 }
0x19ed   :  { %v2716_v44 = vmul.f32 %v3330_v42, %v2700_v48 }
0x19ee   :  { %v3332_v45 = vpop.eup %3331 }
0x19ef   :  { %v2725_v46 = vmul.f32 %v2926_v43, %v2716_v44  ;;  %v2717_v47 = vmul.f32 %v3332_v45, %v2701_v32 }
0x19f1   :  { %v2734_v50 = vadd.f32 %v2927_v4, %v2725_v46  ;;  %v2726_v51 = vmul.f32 %v2926_v43, %v2717_v47 }
0x19f3   :  { %v2736_v53 = vsel %vm313_vm3, %v2734_v50, 0.0  ;;  %v2735_v54 = vadd.f32 %v2927_v4, %v2726_v51 }
0x19f4   :  { %v2737_v55 = vrot.slane %v2736_v53, 4 }
0x19f5   :  { %v2743_v56 = vsel %vm313_vm3, %v2735_v54, 0.0 }
0x19f6   :  { %v2738_v58 = vadd.f32 %v2737_v55, %v2736_v53  ;;  %v2744_v28 = vrot.slane %v2743_v56, 4 }
0x19f8   :  { %v2739_v31 = vrot.slane %v2738_v58, 2  ;;  %v2745_v59 = vadd.f32 %v2744_v28, %v2743_v56 }
0x19fa   :  { %v2740_v60 = vadd.f32 %v2739_v31, %v2738_v58  ;;  %v2746_v62 = vrot.slane %v2745_v59, 2 }
0x19fc   :  { %v2741_v63 = vrot.slane %v2740_v60, 1  ;;  %v2747_v0 = vadd.f32 %v2746_v62, %v2745_v59 }
0x19fe   :  { %v2742_v1 = vadd.f32 %v2741_v63, %v2740_v60  ;;  %v2748_v2 = vrot.slane %v2747_v0, 1 }
0x1a00   :  { %v2751_v3 = vmul.f32 0.125, %v2742_v1  ;;  %v2749_v5 = vadd.f32 %v2748_v2, %v2747_v0 }
0x1a02   :  { %v2753_v7 = vsub.f32 %v2734_v50, %v2751_v3  ;;  %v2752_v8 = vmul.f32 0.125, %v2749_v5 }
0x1a04   :  { %v2754_v9 = vsub.f32 %v2735_v54, %v2752_v8  ;;  %v2755_v10 = vmax.f32 %v2753_v7, 0.0 }
0x1a06   :  { %v2756_v11 = vmax.f32 %v2754_v9, 0.0  ;;  %v2757_v12 = vpack.c.bf16 %v2755_v10, %v2755_v10 }
0x1a08   :  { %v2758_v13 = vpack.c.bf16 %v2756_v11, %v2756_v11  ;;  %v2772_v41 = vunpack.c.l.b16 %v2757_v12 }
0x1a0a   :  { %v2773_v14 = vunpack.c.l.b16 %v2758_v13  ;;  %v2774_v16 = vrot.slane %v2772_v41, 7 }
0x1a0c   :  { %v2775_v17 = vrot.slane %v2773_v14, 6 }
0x1a0e   :  { %v2777_v57 = vsel %vm2776_vm0, %v2775_v17, %v2774_v16 }
0x1a0f   :  { %v2778_v35 = vpack.c.b16 %v2777_v57, %v2777_v57 }
0x1a11   :  { %3242 = vmatmul.mubr.msk.bf16.vlgmr.msra.gmra.mrb[40].mxu1 %vm313_vm3, %v2778_v35 }
0x1ae4   :  { %v2828_v18 = vpop.f32.mrb[40].mxu1 }
0x1ae5   :  { %v2829_v19 = vadd.f32 %v2928_v6, %v2828_v18  ;;  %v3243_v20 = vpop.f32.mrb[41].mxu1 }
0x1ae6   :  { %v2831_v22 = vpop.f32.mrb[42].mxu1 }
0x1ae7   :  { %v3244_v24 = vpop.f32.mrb[43].mxu1  ;;  %2835 = vst.msk [vmem:[#allocation2] sm:$0x3] %vm2834_vm1, %v2829_v19 }
0x1ae8   :  { %3344 = shalt.err (!%p3341_p4)
}
0x1ae9   :  { %s3345_s15 = scalar_lea.hbm %s3942_s16, 32 }
0x1aea   :  { %p3346_p5 = scmp.ne.s32.totalorder %s3942_s16, %s3345_s15  ;;  %p3349_p6 = scmp.lt.u32.totalorder %s3345_s15, %s3942_s16 }
0x1aec   :  { %p3351_p7 = pnand %p3349_p6, %p3346_p5 }
0x1aee   :  { %3354 = shalt.err (!%p3351_p7)
}
0x1aef   :  { %2845 = dma.vmem_to_hbm [thread:$0]  %s2843_s3, 32, %s3942_s16, [#allocation3]  }
0x1af0   :  { %3355 = dma.done.wait [#allocation3], 32  }
0x1af1   :  { %3356 = vsyncadd [#allocation3], 4294967264 }
0x1af2   :  { %2849 = vsyncpa [#allocation3], 1 }

</bundles_post_ra>
